<compile_context>
chip_gen: v5e
topology: v5e:2x2
jax: 0.10.0
libtpu: 0.0.40
codegen_flags: <defaults>
</compile_context>

<pallas_src>
import functools

import jax
import jax.numpy as jnp
from jax.experimental import pallas as pl
from jax.experimental.pallas import tpu as pltpu

HEAD_PAD = 128  # mu / logvar each padded to one full lane width


# ----------------------------------------------------------------------------
# Fused Pallas kernel: whole VAE forward for one batch tile, VMEM-resident.
# ----------------------------------------------------------------------------
def _vae_fused_kernel(x_ref, eps_ref,
                      w_enc1, b_enc1, w_enc2, b_enc2,
                      w_fce, b_fce, w_head, b_head,
                      w_fcd, b_fcd, w_dec1, b_dec1, w_dec2, b_dec2,
                      recon_ref, mu_ref, logvar_ref):
    def dense(h, w_ref, b_ref, act, out_dtype):
        w = w_ref[...]
        acc = jnp.dot(h.astype(w.dtype), w, preferred_element_type=jnp.float32)
        acc = acc + b_ref[...]
        if act == "relu":
            acc = jnp.maximum(acc, 0.0)
        elif act == "sigmoid":
            # exp (EUP) + approx reciprocal (EUP) instead of a VALU divide.
            acc = pl.reciprocal(1.0 + jnp.exp(-acc), approx=True)
        return acc.astype(out_dtype)

    # ---- encoder (convs folded into lane-dense GEMMs); bf16 activation storage ----
    h = dense(x_ref[...], w_enc1, b_enc1, "relu", jnp.bfloat16)      # [TB, 8*8*8]
    h = dense(h, w_enc2, b_enc2, "relu", jnp.bfloat16)               # [TB, 16*4*4]
    h = dense(h, w_fce, b_fce, "relu", jnp.float32)                  # [TB, enc_out]

    # ---- fused lane-aligned mu || logvar head (f32) + reparameterization ----
    head = dense(h, w_head, b_head, "none", jnp.float32)             # [TB, 256]
    mu = head[:, :HEAD_PAD]                                          # lanes 0-127
    logvar = head[:, HEAD_PAD:]                                      # lanes 128-255
    std = jnp.exp(0.5 * logvar)
    z = eps_ref[...] * std + mu                                      # [TB, 128] f32

    # ---- decoder (transposed convs folded into lane-dense GEMMs) ----
    d = dense(z, w_fcd, b_fcd, "relu", jnp.bfloat16)                 # [TB, 16*4*4]
    d = dense(d, w_dec1, b_dec1, "relu", jnp.bfloat16)               # [TB, 8*8*8]
    recon = dense(d, w_dec2, b_dec2, "sigmoid", jnp.float32)         # [TB, C*H*W]

    recon_ref[...] = recon
    mu_ref[...] = mu
    logvar_ref[...] = logvar


# ----------------------------------------------------------------------------
# One-time setup: fold conv / conv-transpose weights into exact dense matrices
# acting on flattened [C*H*W] activations (PyTorch NCHW flatten order).
# ----------------------------------------------------------------------------
def _conv2d_to_dense(w, b, H, W, stride, pad):
    """nn.Conv2d as y_flat = x_flat @ D + b_flat  ([C*H*W] -> [OC*OH*OW])."""
    OC, C, KH, KW = w.shape
    OH = (H + 2 * pad - KH) // stride + 1
    OW = (W + 2 * pad - KW) // stride + 1
    ih = jnp.arange(H)[:, None]
    iw = jnp.arange(W)[:, None]
    oh = jnp.arange(OH)[None, :]
    ow = jnp.arange(OW)[None, :]
    dense = jnp.zeros((C, H, W, OC, OH, OW), jnp.float32)
    for ki in range(KH):
        for kj in range(KW):
            sh = (ih == oh * stride - pad + ki).astype(jnp.float32)   # [H, OH]
            sw = (iw == ow * stride - pad + kj).astype(jnp.float32)   # [W, OW]
            dense = dense + jnp.einsum("oc,hp,wq->chwopq",
                                       w[:, :, ki, kj], sh, sw)
    D = dense.reshape(C * H * W, OC * OH * OW)
    b_flat = jnp.repeat(b, OH * OW)
    return D, b_flat, (OC, OH, OW)


def _conv_transpose2d_to_dense(w, b, H, W, stride, pad, out_pad):
    """nn.ConvTranspose2d as a dense matrix on flattened activations."""
    Cin, OC, KH, KW = w.shape
    OH = (H - 1) * stride - 2 * pad + KH + out_pad
    OW = (W - 1) * stride - 2 * pad + KW + out_pad
    ih = jnp.arange(H)[:, None]
    iw = jnp.arange(W)[:, None]
    oh = jnp.arange(OH)[None, :]
    ow = jnp.arange(OW)[None, :]
    dense = jnp.zeros((Cin, H, W, OC, OH, OW), jnp.float32)
    for ki in range(KH):
        for kj in range(KW):
            sh = (oh == ih * stride - pad + ki).astype(jnp.float32)   # [H, OH]
            sw = (ow == iw * stride - pad + kj).astype(jnp.float32)   # [W, OW]
            dense = dense + jnp.einsum("co,hp,wq->chwopq",
                                       w[:, :, ki, kj], sh, sw)
    D = dense.reshape(Cin * H * W, OC * OH * OW)
    b_flat = jnp.repeat(b, OH * OW)
    return D, b_flat, (OC, OH, OW)


def init_params(key, input_size, encoder_output_size, embedding_size):
    C, H, W = input_size
    flat = 16 * (H // 4) * (W // 4)
    ks = jax.random.split(key, 8)

    def w(k, shape, fan_in):
        return (jax.random.normal(k, shape, jnp.float32)
                / jnp.sqrt(fan_in)).astype(jnp.float32)

    return {
        # encoder
        "conv1_w": w(ks[0], (8, C, 3, 3), C * 9),   "conv1_b": jnp.zeros((8,), jnp.float32),
        "conv2_w": w(ks[1], (16, 8, 3, 3), 8 * 9),  "conv2_b": jnp.zeros((16,), jnp.float32),
        "fc_enc_w": w(ks[2], (flat, encoder_output_size), flat),
        "fc_enc_b": jnp.zeros((encoder_output_size,), jnp.float32),
        # heads
        "mu_w": w(ks[3], (encoder_output_size, embedding_size), encoder_output_size),
        "mu_b": jnp.zeros((embedding_size,), jnp.float32),
        "var_w": w(ks[4], (encoder_output_size, embedding_size), encoder_output_size),
        "var_b": jnp.zeros((embedding_size,), jnp.float32),
        # decoder
        "fc_dec_w": w(ks[5], (embedding_size, flat), embedding_size),
        "fc_dec_b": jnp.zeros((flat,), jnp.float32),
        "deconv1_w": w(ks[6], (16, 8, 3, 3), 16 * 9), "deconv1_b": jnp.zeros((8,), jnp.float32),
        "deconv2_w": w(ks[7], (8, C, 3, 3), 8 * 9),   "deconv2_b": jnp.zeros((C,), jnp.float32),
    }


def prepare_dense_params(params, input_size, embedding_size):
    """Fold convs into dense GEMMs, pad mu||logvar head to lane width, quantize."""
    C, H, W = input_size
    E = embedding_size

    def wq(x):                      # large GEMM operands -> bf16 (MXU native path)
        return x.astype(jnp.bfloat16)

    def bq(x):                      # biases stay f32, shaped [1, N] for broadcast
        return x.reshape(1, -1).astype(jnp.float32)

    d1, db1, (_, H2, W2) = _conv2d_to_dense(params["conv1_w"], params["conv1_b"],
                                            H, W, stride=2, pad=1)
    d2, db2, (_, H4, W4) = _conv2d_to_dense(params["conv2_w"], params["conv2_b"],
                                            H2, W2, stride=2, pad=1)
    t1, tb1, (_, H2b, W2b) = _conv_transpose2d_to_dense(
        params["deconv1_w"], params["deconv1_b"], H4, W4, stride=2, pad=1, out_pad=1)
    t2, tb2, _ = _conv_transpose2d_to_dense(
        params["deconv2_w"], params["deconv2_b"], H2b, W2b, stride=2, pad=1, out_pad=1)

    # Guard: conv->dense folding scales as (C*H*W)*(OC*OH*OW) and will blow VMEM
    # (v7x: 64 MiB) for larger images.
    # TODO(synk): switch conv layers to im2col-tiled GEMMs / emit_pipeline if
    # input_size ever grows beyond ~32x32.
    folded_bytes = 2 * (d1.size + d2.size + t1.size + t2.size)        # bf16
    assert folded_bytes < 24 * 1024 * 1024, (
        "conv->dense folding too large for VMEM; use im2col-tiled convs instead")

    flat = 16 * (H // 4) * (W // 4)
    enc_out = params["fc_enc_w"].shape[1]

    # Lane-aligned fused head: mu in lanes [0,128), logvar in lanes [128,256).
    mu_w_pad = jnp.zeros((enc_out, HEAD_PAD), jnp.float32).at[:, :E].set(params["mu_w"])
    var_w_pad = jnp.zeros((enc_out, HEAD_PAD), jnp.float32).at[:, :E].set(params["var_w"])
    head_w = jnp.concatenate([mu_w_pad, var_w_pad], axis=1)           # [enc_out, 256] f32
    mu_b_pad = jnp.zeros((HEAD_PAD,), jnp.float32).at[:E].set(params["mu_b"])
    var_b_pad = jnp.zeros((HEAD_PAD,), jnp.float32).at[:E].set(params["var_b"])
    head_b = jnp.concatenate([mu_b_pad, var_b_pad], axis=0)

    # fc_dec consumes the 128-lane padded z; rows E..127 are zero.
    fc_dec_w_pad = (jnp.zeros((HEAD_PAD, flat), jnp.float32)
                    .at[:E, :].set(params["fc_dec_w"]))

    return {
        "enc1_w": wq(d1), "enc1_b": bq(db1),
        "enc2_w": wq(d2), "enc2_b": bq(db2),
        "fc_enc_w": wq(params["fc_enc_w"]), "fc_enc_b": bq(params["fc_enc_b"]),
        # tiny GEMMs kept f32 (numerics of exp(0.5*logvar); no MXU throughput cost)
        "head_w": head_w, "head_b": bq(head_b),
        "fc_dec_w": fc_dec_w_pad, "fc_dec_b": bq(params["fc_dec_b"]),
        "dec1_w": wq(t1), "dec1_b": bq(tb1),
        "dec2_w": wq(t2), "dec2_b": bq(tb2),
    }


# ----------------------------------------------------------------------------
# Jitted forward: batch-tiled single fused pallas_call.
# ----------------------------------------------------------------------------
@functools.partial(jax.jit, static_argnames=("input_size", "embedding_size"))
def vae_forward(dp, x, eps, input_size, embedding_size):
    C, H, W = input_size
    E = embedding_size
    CHW = C * H * W
    x_flat = x.reshape(-1, CHW).astype(jnp.bfloat16)     # view(-1, *input_size), bf16 DMA
    B = x_flat.shape[0]

    # Batch tile: multiple of 8 sublanes; 256 rows for real batches (fills MXU M dim).
    TB = 256 if B >= 256 else ((B + 7) // 8) * 8
    nb = (B + TB - 1) // TB
    B_pad = nb * TB

    x_pad = jnp.zeros((B_pad, CHW), jnp.bfloat16).at[:B].set(x_flat)
    eps_pad = (jnp.zeros((B_pad, HEAD_PAD), jnp.float32)
               .at[:B, :E].set(eps.astype(jnp.float32)))

    weights = [dp["enc1_w"], dp["enc2_w"], dp["fc_enc_w"], dp["head_w"],
               dp["fc_dec_w"], dp["dec1_w"], dp["dec2_w"]]
    biases = [dp["enc1_b"], dp["enc2_b"], dp["fc_enc_b"], dp["head_b"],
              dp["fc_dec_b"], dp["dec1_b"], dp["dec2_b"]]

    args = [x_pad, eps_pad]
    in_specs = [
        pl.BlockSpec((TB, CHW), lambda i: (i, 0)),
        pl.BlockSpec((TB, HEAD_PAD), lambda i: (i, 0)),
    ]
    for wgt, bias in zip(weights, biases):
        args += [wgt, bias]
        in_specs += [pl.BlockSpec(wgt.shape, lambda i: (0, 0)),   # VMEM-resident
                     pl.BlockSpec(bias.shape, lambda i: (0, 0))]

    flops = 2 * B_pad * sum(int(w.shape[0]) * int(w.shape[1]) for w in weights)
    bytes_accessed = int(sum(a.size * a.dtype.itemsize for a in weights + biases))
    bytes_accessed += int(x_pad.size * 2 + eps_pad.size * 4
                          + B_pad * (CHW + 2 * HEAD_PAD) * 4)

    recon_flat, mu_pad, logvar_pad = pl.pallas_call(
        _vae_fused_kernel,
        grid=(nb,),
        out_shape=(
            jax.ShapeDtypeStruct((B_pad, CHW), jnp.float32),
            jax.ShapeDtypeStruct((B_pad, HEAD_PAD), jnp.float32),
            jax.ShapeDtypeStruct((B_pad, HEAD_PAD), jnp.float32),
        ),
        in_specs=in_specs,
        out_specs=(
            pl.BlockSpec((TB, CHW), lambda i: (i, 0)),
            pl.BlockSpec((TB, HEAD_PAD), lambda i: (i, 0)),
            pl.BlockSpec((TB, HEAD_PAD), lambda i: (i, 0)),
        ),
        compiler_params=pltpu.CompilerParams(
            dimension_semantics=("parallel",),            # v7x: shard tiles over 2 TCs
            vmem_limit_bytes=32 * 1024 * 1024),
        cost_estimate=pl.CostEstimate(
            flops=flops,
            transcendentals=int(B_pad * (CHW + 2 * HEAD_PAD)),
            bytes_accessed=bytes_accessed),
    )(*args)

    recon = recon_flat[:B].reshape(B, C, H, W)
    mu = mu_pad[:B, :E]
    logvar = logvar_pad[:B, :E]
    return recon, mu, logvar


# ----------------------------------------------------------------------------
# Pure-JAX reference (f32, same folded/padded weights) for a correctness check.
# ----------------------------------------------------------------------------
def _reference_forward(dp, x_flat, eps_pad, E):
    def dense(h, w, b, act):
        y = h @ w.astype(jnp.float32) + b.astype(jnp.float32)
        if act == "relu":
            return jnp.maximum(y, 0.0)
        if act == "sigmoid":
            return jax.nn.sigmoid(y)
        return y

    h = dense(x_flat, dp["enc1_w"], dp["enc1_b"], "relu")
    h = dense(h, dp["enc2_w"], dp["enc2_b"], "relu")
    h = dense(h, dp["fc_enc_w"], dp["fc_enc_b"], "relu")
    head = dense(h, dp["head_w"], dp["head_b"], "none")
    mu, logvar = head[:, :HEAD_PAD], head[:, HEAD_PAD:]
    z = eps_pad * jnp.exp(0.5 * logvar) + mu
    d = dense(z, dp["fc_dec_w"], dp["fc_dec_b"], "relu")
    d = dense(d, dp["dec1_w"], dp["dec1_b"], "relu")
    recon = dense(d, dp["dec2_w"], dp["dec2_b"], "sigmoid")
    return recon, mu[:, :E], logvar[:, :E]


if __name__ == "__main__":
    input_size = (1, 16, 16)
    encoder_output_size = 32
    embedding_size = 8
    batch = 2

    key = jax.random.PRNGKey(0)
    k_param, k_x, k_eps = jax.random.split(key, 3)

    params = init_params(k_param, input_size, encoder_output_size, embedding_size)
    dp = prepare_dense_params(params, input_size, embedding_size)

    x = jax.random.normal(k_x, (batch,) + input_size, jnp.float32)
    # TODO(synk): eps is drawn host-side with jax.random for determinism instead
    # of torch.randn_like / in-kernel pltpu PRNG.
    eps = jax.random.normal(k_eps, (batch, embedding_size), jnp.float32)

    recon, mu, logvar = vae_forward(dp, x, eps, input_size, embedding_size)
    jax.block_until_ready((recon, mu, logvar))

    assert recon.shape == (batch,) + input_size
    assert mu.shape == (batch, embedding_size)
    assert logvar.shape == (batch, embedding_size)

    # Sanity check against an f32 pure-JAX reference (tolerance covers bf16 GEMMs
    # and the approx-reciprocal sigmoid).
    x_flat = x.reshape(batch, -1).astype(jnp.float32)
    eps_pad = jnp.zeros((batch, HEAD_PAD), jnp.float32).at[:, :embedding_size].set(eps)
    ref_recon, ref_mu, ref_logvar = _reference_forward(dp, x_flat, eps_pad, embedding_size)
    assert bool(jnp.allclose(recon.reshape(batch, -1), ref_recon, atol=1e-1, rtol=1e-1))
    assert bool(jnp.allclose(mu, ref_mu, atol=1e-1, rtol=1e-1))
    assert bool(jnp.allclose(logvar, ref_logvar, atol=1e-1, rtol=1e-1))
    assert bool(jnp.all(jnp.isfinite(recon)))

    print("KERNEL_OK")
</pallas_src>

<mosaic_0001>
module attributes {stable_mosaic.version = 11 : i64} {
  func.func @_vae_fused_kernel(%arg0: i32, %arg1: memref<8x256xbf16, #tpu.memory_space<vmem>>, %arg2: memref<8x128xf32, #tpu.memory_space<vmem>>, %arg3: memref<256x512xbf16, #tpu.memory_space<vmem>>, %arg4: memref<1x512xf32, #tpu.memory_space<vmem>>, %arg5: memref<512x256xbf16, #tpu.memory_space<vmem>>, %arg6: memref<1x256xf32, #tpu.memory_space<vmem>>, %arg7: memref<256x32xbf16, #tpu.memory_space<vmem>>, %arg8: memref<1x32xf32, #tpu.memory_space<vmem>>, %arg9: memref<32x256xf32, #tpu.memory_space<vmem>>, %arg10: memref<1x256xf32, #tpu.memory_space<vmem>>, %arg11: memref<128x256xf32, #tpu.memory_space<vmem>>, %arg12: memref<1x256xf32, #tpu.memory_space<vmem>>, %arg13: memref<256x512xbf16, #tpu.memory_space<vmem>>, %arg14: memref<1x512xf32, #tpu.memory_space<vmem>>, %arg15: memref<512x256xbf16, #tpu.memory_space<vmem>>, %arg16: memref<1x256xf32, #tpu.memory_space<vmem>>, %arg17: memref<8x256xf32, #tpu.memory_space<vmem>>, %arg18: memref<8x128xf32, #tpu.memory_space<vmem>>, %arg19: memref<8x128xf32, #tpu.memory_space<vmem>>) attributes {dimension_semantics = [#tpu.dimension_semantics<parallel>], iteration_bounds = array<i64: 1>, scalar_prefetch = 0 : i64, scratch_operands = 0 : i64, tpu.core_type = #tpu.core_type<tc>, window_params = [{transform_indices = @transform_0, window_bounds = array<i64: 8, 256>}, {transform_indices = @transform_1, window_bounds = array<i64: 8, 128>}, {pipeline_mode = #tpu.pipeline_mode<synchronous>, transform_indices = @transform_2, window_bounds = array<i64: 256, 512>}, {pipeline_mode = #tpu.pipeline_mode<synchronous>, transform_indices = @transform_3, window_bounds = array<i64: 1, 512>}, {pipeline_mode = #tpu.pipeline_mode<synchronous>, transform_indices = @transform_4, window_bounds = array<i64: 512, 256>}, {pipeline_mode = #tpu.pipeline_mode<synchronous>, transform_indices = @transform_5, window_bounds = array<i64: 1, 256>}, {pipeline_mode = #tpu.pipeline_mode<synchronous>, transform_indices = @transform_6, window_bounds = array<i64: 256, 32>}, {pipeline_mode = #tpu.pipeline_mode<synchronous>, transform_indices = @transform_7, window_bounds = array<i64: 1, 32>}, {pipeline_mode = #tpu.pipeline_mode<synchronous>, transform_indices = @transform_8, window_bounds = array<i64: 32, 256>}, {pipeline_mode = #tpu.pipeline_mode<synchronous>, transform_indices = @transform_9, window_bounds = array<i64: 1, 256>}, {pipeline_mode = #tpu.pipeline_mode<synchronous>, transform_indices = @transform_10, window_bounds = array<i64: 128, 256>}, {pipeline_mode = #tpu.pipeline_mode<synchronous>, transform_indices = @transform_11, window_bounds = array<i64: 1, 256>}, {pipeline_mode = #tpu.pipeline_mode<synchronous>, transform_indices = @transform_12, window_bounds = array<i64: 256, 512>}, {pipeline_mode = #tpu.pipeline_mode<synchronous>, transform_indices = @transform_13, window_bounds = array<i64: 1, 512>}, {pipeline_mode = #tpu.pipeline_mode<synchronous>, transform_indices = @transform_14, window_bounds = array<i64: 512, 256>}, {pipeline_mode = #tpu.pipeline_mode<synchronous>, transform_indices = @transform_15, window_bounds = array<i64: 1, 256>}, {transform_indices = @transform_16, window_bounds = array<i64: 8, 256>}, {transform_indices = @transform_17, window_bounds = array<i64: 8, 128>}, {transform_indices = @transform_18, window_bounds = array<i64: 8, 128>}]} {
    %c0 = arith.constant 0 : index
    %c0_0 = arith.constant 0 : index
    %0 = vector.load %arg1[%c0, %c0_0] : memref<8x256xbf16, #tpu.memory_space<vmem>>, vector<8x256xbf16>
    %c0_1 = arith.constant 0 : index
    %c0_2 = arith.constant 0 : index
    %1 = vector.load %arg3[%c0_1, %c0_2] : memref<256x512xbf16, #tpu.memory_space<vmem>>, vector<256x512xbf16>
    %cst = arith.constant dense<0.000000e+00> : vector<8x512xf32>
    %2 = tpu.matmul %0, %1, %cst {dimension_numbers = #tpu.dot_dimension_numbers<[1], [0], [0], [1], [0, 0, 1, 1], [], []>} : vector<8x256xbf16>, vector<256x512xbf16>, vector<8x512xf32> -> vector<8x512xf32>
    %c0_3 = arith.constant 0 : index
    %c0_4 = arith.constant 0 : index
    %3 = vector.load %arg4[%c0_3, %c0_4] : memref<1x512xf32, #tpu.memory_space<vmem>>, vector<1x512xf32>
    %4 = vector.broadcast %3 : vector<1x512xf32> to vector<8x512xf32>
    %5 = arith.addf %2, %4 : vector<8x512xf32>
    %cst_5 = arith.constant 0.000000e+00 : f32
    %6 = vector.broadcast %cst_5 : f32 to vector<8x512xf32>
    %7 = arith.maximumf %5, %6 : vector<8x512xf32>
    %8 = arith.truncf %7 : vector<8x512xf32> to vector<8x512xbf16>
    %c0_6 = arith.constant 0 : index
    %c0_7 = arith.constant 0 : index
    %9 = vector.load %arg5[%c0_6, %c0_7] : memref<512x256xbf16, #tpu.memory_space<vmem>>, vector<512x256xbf16>
    %cst_8 = arith.constant dense<0.000000e+00> : vector<8x256xf32>
    %10 = tpu.matmul %8, %9, %cst_8 {dimension_numbers = #tpu.dot_dimension_numbers<[1], [0], [0], [1], [0, 0, 1, 1], [], []>} : vector<8x512xbf16>, vector<512x256xbf16>, vector<8x256xf32> -> vector<8x256xf32>
    %c0_9 = arith.constant 0 : index
    %c0_10 = arith.constant 0 : index
    %11 = vector.load %arg6[%c0_9, %c0_10] : memref<1x256xf32, #tpu.memory_space<vmem>>, vector<1x256xf32>
    %12 = vector.broadcast %11 : vector<1x256xf32> to vector<8x256xf32>
    %13 = arith.addf %10, %12 : vector<8x256xf32>
    %cst_11 = arith.constant 0.000000e+00 : f32
    %14 = vector.broadcast %cst_11 : f32 to vector<8x256xf32>
    %15 = arith.maximumf %13, %14 : vector<8x256xf32>
    %16 = arith.truncf %15 : vector<8x256xf32> to vector<8x256xbf16>
    %c0_12 = arith.constant 0 : index
    %c0_13 = arith.constant 0 : index
    %17 = vector.load %arg7[%c0_12, %c0_13] : memref<256x32xbf16, #tpu.memory_space<vmem>>, vector<256x32xbf16>
    %cst_14 = arith.constant dense<0.000000e+00> : vector<8x32xf32>
    %18 = tpu.matmul %16, %17, %cst_14 {dimension_numbers = #tpu.dot_dimension_numbers<[1], [0], [0], [1], [0, 0, 1, 1], [], []>} : vector<8x256xbf16>, vector<256x32xbf16>, vector<8x32xf32> -> vector<8x32xf32>
    %c0_15 = arith.constant 0 : index
    %c0_16 = arith.constant 0 : index
    %19 = vector.load %arg8[%c0_15, %c0_16] : memref<1x32xf32, #tpu.memory_space<vmem>>, vector<1x32xf32>
    %20 = vector.broadcast %19 : vector<1x32xf32> to vector<8x32xf32>
    %21 = arith.addf %18, %20 : vector<8x32xf32>
    %cst_17 = arith.constant 0.000000e+00 : f32
    %22 = vector.broadcast %cst_17 : f32 to vector<8x32xf32>
    %23 = arith.maximumf %21, %22 : vector<8x32xf32>
    %c0_18 = arith.constant 0 : index
    %c0_19 = arith.constant 0 : index
    %24 = vector.load %arg9[%c0_18, %c0_19] : memref<32x256xf32, #tpu.memory_space<vmem>>, vector<32x256xf32>
    %cst_20 = arith.constant dense<0.000000e+00> : vector<8x256xf32>
    %25 = tpu.matmul %23, %24, %cst_20 {dimension_numbers = #tpu.dot_dimension_numbers<[1], [0], [0], [1], [0, 0, 1, 1], [], []>} : vector<8x32xf32>, vector<32x256xf32>, vector<8x256xf32> -> vector<8x256xf32>
    %c0_21 = arith.constant 0 : index
    %c0_22 = arith.constant 0 : index
    %26 = vector.load %arg10[%c0_21, %c0_22] : memref<1x256xf32, #tpu.memory_space<vmem>>, vector<1x256xf32>
    %27 = vector.broadcast %26 : vector<1x256xf32> to vector<8x256xf32>
    %28 = arith.addf %25, %27 : vector<8x256xf32>
    %29 = vector.extract_strided_slice %28 {offsets = [0, 0], sizes = [8, 128], strides = [1, 1]} : vector<8x256xf32> to vector<8x128xf32>
    %30 = vector.extract_strided_slice %28 {offsets = [0, 128], sizes = [8, 128], strides = [1, 1]} : vector<8x256xf32> to vector<8x128xf32>
    %cst_23 = arith.constant 5.000000e-01 : f32
    %31 = vector.broadcast %cst_23 : f32 to vector<8x128xf32>
    %32 = arith.mulf %31, %30 : vector<8x128xf32>
    %33 = math.exp %32 : vector<8x128xf32>
    %c0_24 = arith.constant 0 : index
    %c0_25 = arith.constant 0 : index
    %34 = vector.load %arg2[%c0_24, %c0_25] : memref<8x128xf32, #tpu.memory_space<vmem>>, vector<8x128xf32>
    %35 = arith.mulf %34, %33 : vector<8x128xf32>
    %36 = arith.addf %35, %29 : vector<8x128xf32>
    %c0_26 = arith.constant 0 : index
    %c0_27 = arith.constant 0 : index
    %37 = vector.load %arg11[%c0_26, %c0_27] : memref<128x256xf32, #tpu.memory_space<vmem>>, vector<128x256xf32>
    %cst_28 = arith.constant dense<0.000000e+00> : vector<8x256xf32>
    %38 = tpu.matmul %36, %37, %cst_28 {dimension_numbers = #tpu.dot_dimension_numbers<[1], [0], [0], [1], [0, 0, 1, 1], [], []>} : vector<8x128xf32>, vector<128x256xf32>, vector<8x256xf32> -> vector<8x256xf32>
    %c0_29 = arith.constant 0 : index
    %c0_30 = arith.constant 0 : index
    %39 = vector.load %arg12[%c0_29, %c0_30] : memref<1x256xf32, #tpu.memory_space<vmem>>, vector<1x256xf32>
    %40 = vector.broadcast %39 : vector<1x256xf32> to vector<8x256xf32>
    %41 = arith.addf %38, %40 : vector<8x256xf32>
    %cst_31 = arith.constant 0.000000e+00 : f32
    %42 = vector.broadcast %cst_31 : f32 to vector<8x256xf32>
    %43 = arith.maximumf %41, %42 : vector<8x256xf32>
    %44 = arith.truncf %43 : vector<8x256xf32> to vector<8x256xbf16>
    %c0_32 = arith.constant 0 : index
    %c0_33 = arith.constant 0 : index
    %45 = vector.load %arg13[%c0_32, %c0_33] : memref<256x512xbf16, #tpu.memory_space<vmem>>, vector<256x512xbf16>
    %cst_34 = arith.constant dense<0.000000e+00> : vector<8x512xf32>
    %46 = tpu.matmul %44, %45, %cst_34 {dimension_numbers = #tpu.dot_dimension_numbers<[1], [0], [0], [1], [0, 0, 1, 1], [], []>} : vector<8x256xbf16>, vector<256x512xbf16>, vector<8x512xf32> -> vector<8x512xf32>
    %c0_35 = arith.constant 0 : index
    %c0_36 = arith.constant 0 : index
    %47 = vector.load %arg14[%c0_35, %c0_36] : memref<1x512xf32, #tpu.memory_space<vmem>>, vector<1x512xf32>
    %48 = vector.broadcast %47 : vector<1x512xf32> to vector<8x512xf32>
    %49 = arith.addf %46, %48 : vector<8x512xf32>
    %cst_37 = arith.constant 0.000000e+00 : f32
    %50 = vector.broadcast %cst_37 : f32 to vector<8x512xf32>
    %51 = arith.maximumf %49, %50 : vector<8x512xf32>
    %52 = arith.truncf %51 : vector<8x512xf32> to vector<8x512xbf16>
    %c0_38 = arith.constant 0 : index
    %c0_39 = arith.constant 0 : index
    %53 = vector.load %arg15[%c0_38, %c0_39] : memref<512x256xbf16, #tpu.memory_space<vmem>>, vector<512x256xbf16>
    %cst_40 = arith.constant dense<0.000000e+00> : vector<8x256xf32>
    %54 = tpu.matmul %52, %53, %cst_40 {dimension_numbers = #tpu.dot_dimension_numbers<[1], [0], [0], [1], [0, 0, 1, 1], [], []>} : vector<8x512xbf16>, vector<512x256xbf16>, vector<8x256xf32> -> vector<8x256xf32>
    %c0_41 = arith.constant 0 : index
    %c0_42 = arith.constant 0 : index
    %55 = vector.load %arg16[%c0_41, %c0_42] : memref<1x256xf32, #tpu.memory_space<vmem>>, vector<1x256xf32>
    %56 = vector.broadcast %55 : vector<1x256xf32> to vector<8x256xf32>
    %57 = arith.addf %54, %56 : vector<8x256xf32>
    %cst_43 = arith.constant 0.000000e+00 : f32
    %58 = vector.broadcast %cst_43 : f32 to vector<8x256xf32>
    %59 = arith.subf %58, %57 : vector<8x256xf32>
    %60 = math.exp %59 : vector<8x256xf32>
    %cst_44 = arith.constant 1.000000e+00 : f32
    %61 = vector.broadcast %cst_44 : f32 to vector<8x256xf32>
    %62 = arith.addf %61, %60 : vector<8x256xf32>
    %63 = tpu.reciprocal %62 {approx = true} : vector<8x256xf32> -> vector<8x256xf32>
    %c0_45 = arith.constant 0 : index
    %c0_46 = arith.constant 0 : index
    %64 = vector.load %arg17[%c0_45, %c0_46] : memref<8x256xf32, #tpu.memory_space<vmem>>, vector<8x256xf32>
    tpu.vector_store %arg17[%c0_45, %c0_46], %63 {strides = array<i32>} : memref<8x256xf32, #tpu.memory_space<vmem>>, vector<8x256xf32>,
    %c0_47 = arith.constant 0 : index
    %c0_48 = arith.constant 0 : index
    %65 = vector.load %arg18[%c0_47, %c0_48] : memref<8x128xf32, #tpu.memory_space<vmem>>, vector<8x128xf32>
    tpu.vector_store %arg18[%c0_47, %c0_48], %29 {strides = array<i32>} : memref<8x128xf32, #tpu.memory_space<vmem>>, vector<8x128xf32>,
    %c0_49 = arith.constant 0 : index
    %c0_50 = arith.constant 0 : index
    %66 = vector.load %arg19[%c0_49, %c0_50] : memref<8x128xf32, #tpu.memory_space<vmem>>, vector<8x128xf32>
    tpu.vector_store %arg19[%c0_49, %c0_50], %30 {strides = array<i32>} : memref<8x128xf32, #tpu.memory_space<vmem>>, vector<8x128xf32>,
    return
  }
  func.func @transform_0(%arg0: i32) -> (i32, i32) {
    %c0_i32 = arith.constant 0 : i32
    %c0_i32_0 = arith.constant 0 : i32
    return %arg0, %c0_i32 : i32, i32
  }
  func.func @transform_1(%arg0: i32) -> (i32, i32) {
    %c0_i32 = arith.constant 0 : i32
    %c0_i32_0 = arith.constant 0 : i32
    return %arg0, %c0_i32 : i32, i32
  }
  func.func @transform_2(%arg0: i32) -> (i32, i32) {
    %c0_i32 = arith.constant 0 : i32
    %c0_i32_0 = arith.constant 0 : i32
    %c0_i32_1 = arith.constant 0 : i32
    return %c0_i32, %c0_i32_0 : i32, i32
  }
  func.func @transform_3(%arg0: i32) -> (i32, i32) {
    %c0_i32 = arith.constant 0 : i32
    %c0_i32_0 = arith.constant 0 : i32
    %c0_i32_1 = arith.constant 0 : i32
    return %c0_i32, %c0_i32_0 : i32, i32
  }
  func.func @transform_4(%arg0: i32) -> (i32, i32) {
    %c0_i32 = arith.constant 0 : i32
    %c0_i32_0 = arith.constant 0 : i32
    %c0_i32_1 = arith.constant 0 : i32
    return %c0_i32, %c0_i32_0 : i32, i32
  }
  func.func @transform_5(%arg0: i32) -> (i32, i32) {
    %c0_i32 = arith.constant 0 : i32
    %c0_i32_0 = arith.constant 0 : i32
    %c0_i32_1 = arith.constant 0 : i32
    return %c0_i32, %c0_i32_0 : i32, i32
  }
  func.func @transform_6(%arg0: i32) -> (i32, i32) {
    %c0_i32 = arith.constant 0 : i32
    %c0_i32_0 = arith.constant 0 : i32
    %c0_i32_1 = arith.constant 0 : i32
    return %c0_i32, %c0_i32_0 : i32, i32
  }
  func.func @transform_7(%arg0: i32) -> (i32, i32) {
    %c0_i32 = arith.constant 0 : i32
    %c0_i32_0 = arith.constant 0 : i32
    %c0_i32_1 = arith.constant 0 : i32
    return %c0_i32, %c0_i32_0 : i32, i32
  }
  func.func @transform_8(%arg0: i32) -> (i32, i32) {
    %c0_i32 = arith.constant 0 : i32
    %c0_i32_0 = arith.constant 0 : i32
    %c0_i32_1 = arith.constant 0 : i32
    return %c0_i32, %c0_i32_0 : i32, i32
  }
  func.func @transform_9(%arg0: i32) -> (i32, i32) {
    %c0_i32 = arith.constant 0 : i32
    %c0_i32_0 = arith.constant 0 : i32
    %c0_i32_1 = arith.constant 0 : i32
    return %c0_i32, %c0_i32_0 : i32, i32
  }
  func.func @transform_10(%arg0: i32) -> (i32, i32) {
    %c0_i32 = arith.constant 0 : i32
    %c0_i32_0 = arith.constant 0 : i32
    %c0_i32_1 = arith.constant 0 : i32
    return %c0_i32, %c0_i32_0 : i32, i32
  }
  func.func @transform_11(%arg0: i32) -> (i32, i32) {
    %c0_i32 = arith.constant 0 : i32
    %c0_i32_0 = arith.constant 0 : i32
    %c0_i32_1 = arith.constant 0 : i32
    return %c0_i32, %c0_i32_0 : i32, i32
  }
  func.func @transform_12(%arg0: i32) -> (i32, i32) {
    %c0_i32 = arith.constant 0 : i32
    %c0_i32_0 = arith.constant 0 : i32
    %c0_i32_1 = arith.constant 0 : i32
    return %c0_i32, %c0_i32_0 : i32, i32
  }
  func.func @transform_13(%arg0: i32) -> (i32, i32) {
    %c0_i32 = arith.constant 0 : i32
    %c0_i32_0 = arith.constant 0 : i32
    %c0_i32_1 = arith.constant 0 : i32
    return %c0_i32, %c0_i32_0 : i32, i32
  }
  func.func @transform_14(%arg0: i32) -> (i32, i32) {
    %c0_i32 = arith.constant 0 : i32
    %c0_i32_0 = arith.constant 0 : i32
    %c0_i32_1 = arith.constant 0 : i32
    return %c0_i32, %c0_i32_0 : i32, i32
  }
  func.func @transform_15(%arg0: i32) -> (i32, i32) {
    %c0_i32 = arith.constant 0 : i32
    %c0_i32_0 = arith.constant 0 : i32
    %c0_i32_1 = arith.constant 0 : i32
    return %c0_i32, %c0_i32_0 : i32, i32
  }
  func.func @transform_16(%arg0: i32) -> (i32, i32) {
    %c0_i32 = arith.constant 0 : i32
    %c0_i32_0 = arith.constant 0 : i32
    return %arg0, %c0_i32 : i32, i32
  }
  func.func @transform_17(%arg0: i32) -> (i32, i32) {
    %c0_i32 = arith.constant 0 : i32
    %c0_i32_0 = arith.constant 0 : i32
    return %arg0, %c0_i32 : i32, i32
  }
  func.func @transform_18(%arg0: i32) -> (i32, i32) {
    %c0_i32 = arith.constant 0 : i32
    %c0_i32_0 = arith.constant 0 : i32
    return %arg0, %c0_i32 : i32, i32
  }
}

</mosaic_0001>

<bundles_post_ra>
// kernel: vae_forward.1
= control target key start
LH: loop header
LB: loop body
LE: loop exit
PB: predicated region body
PF: predicated region fallthrough
CT: control target
= control target key end

     0   :  { %s4634_s0 = inlined_call_operand.vmem [shape: bf16[8,256], index: 0, kind: input, shape index: {}]   ;;  %s4635_s1 = inlined_call_operand.vmem [shape: f32[8,128], index: 1, kind: input, shape index: {}]   ;;  %s4636_s2 = inlined_call_operand.hbm [shape: bf16[256,512], index: 2, kind: input, shape index: {}]   ;;  %s4637_s3 = inlined_call_operand.hbm [shape: f32[1,512], index: 3, kind: input, shape index: {}]   ;;  %s4638_s4 = inlined_call_operand.hbm [shape: bf16[512,256], index: 4, kind: input, shape index: {}]   ;;  %s4639_s5 = inlined_call_operand.hbm [shape: f32[1,256], index: 5, kind: input, shape index: {}]   ;;  %s4640_s6 = inlined_call_operand.vmem [shape: bf16[256,32], index: 6, kind: input, shape index: {}]   ;;  %s4641_s7 = inlined_call_operand.hbm [shape: f32[1,32], index: 7, kind: input, shape index: {}]   ;;  %s4642_s8 = inlined_call_operand.hbm [shape: f32[32,256], index: 8, kind: input, shape index: {}]   ;;  %s4643_s9 = inlined_call_operand.hbm [shape: f32[1,256], index: 9, kind: input, shape index: {}]   ;;  %s4644_s10 = inlined_call_operand.vmem [shape: f32[128,256], index: 10, kind: input, shape index: {}]   ;;  %s4645_s11 = inlined_call_operand.hbm [shape: f32[1,256], index: 11, kind: input, shape index: {}]   ;;  %s4646_s12 = inlined_call_operand.hbm [shape: bf16[256,512], index: 12, kind: input, shape index: {}]   ;;  %s4647_s13 = inlined_call_operand.hbm [shape: f32[1,512], index: 13, kind: input, shape index: {}]   ;;  %s4648_s14 = inlined_call_operand.hbm [shape: bf16[512,256], index: 14, kind: input, shape index: {}]   ;;  %s4649_s15 = inlined_call_operand.hbm [shape: f32[1,256], index: 15, kind: input, shape index: {}]   ;;  %s4650_s16 = inlined_call_operand.vmem [shape: f32[8,256], index: 16, kind: output, shape index: {0}]   ;;  %s4651_s17 = inlined_call_operand.vmem [shape: f32[8,128], index: 17, kind: output, shape index: {1}]   ;;  %s4652_s18 = inlined_call_operand.vmem [shape: f32[8,128], index: 18, kind: output, shape index: {2}]  }
   0x1   :  { %4653 = sst [smem:[#allocation28_spill]] %s4634_s0 }
   0x2   :  { %4654 = sst [smem:[#allocation29_spill]] %s4635_s1 }
   0x3   :  { %4655 = sst [smem:[#allocation30_spill]] %s4636_s2 }
   0x4   :  { %24 = vsyncpa [#allocation3], 0 }
   0x5   :  { %25 = vsyncpa [#allocation5], 0 }
   0x6   :  { %26 = vsyncpa [#allocation8], 0 }
   0x7   :  { %27 = vsyncpa [#allocation11], 0 }
   0x8   :  { %28 = vsyncpa [#allocation14], 0 }
   0x9   :  { %29 = vsyncpa [#allocation17], 0  ;;  %s53_s29 = sshll.u32 %s4637_s3, 4  ;;  %s54_s29 = int_to_ptr.hbm [resolvable:$true] %s53_s29 }
   0xa   :  { %30 = vsyncpa [#allocation20], 0  ;;  %s4270_s30 = smov [#allocation4]   ;;  %s77_s20 = sshll.u32 %s4639_s5, 4  ;;  %s78_s20 = int_to_ptr.hbm [resolvable:$true] %s77_s20 }
   0xb   :  { %s55_s0 = sshll.u32 %s4270_s30, 4  ;;  %s4271_s21 = smov [#allocation7]   ;;  %s56_s0 = int_to_ptr.vmem [resolvable:$true] %s55_s0 }
   0xc   :  { %58 = dma.hbm_to_vmem [thread:$0]  %s54_s29, 64, %s56_s0, [#allocation5]  }
   0xd   :  { %s79_s22 = sshll.u32 %s4271_s21, 4  ;;  %s100_s24 = sshll.u32 %s4642_s8, 4  ;;  %s80_s22 = int_to_ptr.vmem [resolvable:$true] %s79_s22  ;;  %s101_s24 = int_to_ptr.hbm [resolvable:$true] %s100_s24 }
   0xe   :  { %82 = dma.hbm_to_vmem [thread:$0]  %s78_s20, 32, %s80_s22, [#allocation8]  }
   0xf   :  { %s4272_s3 = smov [#allocation10]   ;;  %s127_s28 = sshll.u32 %s4645_s11, 4  ;;  %s128_s28 = int_to_ptr.hbm [resolvable:$true] %s127_s28 }
  0x10   :  { %s102_s25 = sshll.u32 %s4272_s3, 4  ;;  %s4273_s30 = smov 256   ;;  %s103_s25 = int_to_ptr.vmem [resolvable:$true] %s102_s25 }
  0x11   :  { %s4274_s5 = smov 16   ;;  %s4275_s29 = smov [#allocation13]  }
  0x12   :  { %108 = dma.hbm_to_vmem [thread:$0]  %s101_s24, 1024, %s103_s25, [#allocation11], %s4273_s30, %s4273_s30, %s4274_s5  }
  0x13   :  { %s129_s0 = sshll.u32 %s4275_s29, 4  ;;  %s151_s8 = sshll.u32 %s4647_s13, 4  ;;  %s130_s0 = int_to_ptr.vmem [resolvable:$true] %s129_s0  ;;  %s152_s8 = int_to_ptr.hbm [resolvable:$true] %s151_s8 }
  0x14   :  { %132 = dma.hbm_to_vmem [thread:$0]  %s128_s28, 32, %s130_s0, [#allocation14]  }
  0x15   :  { %s4656_s22 = sld [smem:[#allocation30_spill]]  ;;  %s4276_s2 = smov [#allocation16]  }
  0x16   :  { %s153_s23 = sshll.u32 %s4276_s2, 4  ;;  %s4277_s24 = smov [#allocation2]   ;;  %s154_s23 = int_to_ptr.vmem [resolvable:$true] %s153_s23 }
  0x17   :  { %156 = dma.hbm_to_vmem [thread:$0]  %s152_s8, 64, %s154_s23, [#allocation17]  }
  0x18   :  { %s41_s3 = sshll.u32 %s4277_s24, 4  ;;  %s63_s27 = sshll.u32 %s4638_s4, 4  ;;  %s42_s3 = int_to_ptr.vmem [resolvable:$true] %s41_s3  ;;  %s64_s27 = int_to_ptr.hbm [resolvable:$true] %s63_s27 }
  0x19   :  { %s4278_s13 = smov [#allocation6]   ;;  %s90_s19 = sshll.u32 %s4641_s7, 4  ;;  %s91_s19 = int_to_ptr.hbm [resolvable:$true] %s90_s19 }
  0x1a   :  { %s65_s28 = sshll.u32 %s4278_s13, 4  ;;  %s4279_s1 = smov 128   ;;  %s66_s28 = int_to_ptr.vmem [resolvable:$true] %s65_s28 }
  0x1b   :  { %s39_s11 = sshll.u32 %s4656_s22, 4  ;;  %s4280_s8 = smov 8   ;;  %s40_s11 = int_to_ptr.hbm [resolvable:$true] %s39_s11 }
  0x1c   :  { %47 = dma.hbm_to_vmem [thread:$0]  %s40_s11, 8192, %s42_s3, [#allocation3], %s4273_s30, %s4273_s30, %s4274_s5  }
  0x1d   :  { %71 = dma.hbm_to_vmem [thread:$0]  %s64_s27, 8192, %s66_s28, [#allocation5], %s4279_s1, %s4279_s1, %s4280_s8  }
  0x1e   :  { %s4281_s4 = smov [#allocation9]   ;;  %s114_s11 = sshll.u32 %s4643_s9, 4  ;;  %s115_s11 = int_to_ptr.hbm [resolvable:$true] %s114_s11 }
  0x1f   :  { %s92_s20 = sshll.u32 %s4281_s4, 4  ;;  %s137_s7 = sshll.u32 %s4646_s12, 4  ;;  %s93_s20 = int_to_ptr.vmem [resolvable:$true] %s92_s20  ;;  %s138_s7 = int_to_ptr.hbm [resolvable:$true] %s137_s7 }
  0x20   :  { %95 = dma.hbm_to_vmem [thread:$0]  %s91_s19, 16, %s93_s20, [#allocation8]  }
  0x21   :  { %s4282_s24 = smov [#allocation12]   ;;  %s4283_s25 = smov [#allocation15]  }
  0x22   :  { %s116_s3 = sshll.u32 %s4282_s24, 4  ;;  %s139_s26 = sshll.u32 %s4283_s25, 4  ;;  %s117_s3 = int_to_ptr.vmem [resolvable:$true] %s116_s3  ;;  %s140_s26 = int_to_ptr.vmem [resolvable:$true] %s139_s26 }
  0x23   :  { %119 = dma.hbm_to_vmem [thread:$0]  %s115_s11, 32, %s117_s3, [#allocation11]  }
  0x24   :  { %s161_s28 = sshll.u32 %s4648_s14, 4  ;;  %s175_s12 = sshll.u32 %s4649_s15, 4  ;;  %s162_s28 = int_to_ptr.hbm [resolvable:$true] %s161_s28  ;;  %s176_s12 = int_to_ptr.hbm [resolvable:$true] %s175_s12 }
  0x25   :  { %145 = dma.hbm_to_vmem [thread:$0]  %s138_s7, 8192, %s140_s26, [#allocation14], %s4273_s30, %s4273_s30, %s4274_s5  }
  0x26   :  { %s4284_s0 = smov [#allocation18]   ;;  %s4285_s4 = smov [#allocation19]  }
  0x27   :  { %s163_s19 = sshll.u32 %s4284_s0, 4  ;;  %s177_s14 = sshll.u32 %s4285_s4, 4  ;;  %s164_s19 = int_to_ptr.vmem [resolvable:$true] %s163_s19  ;;  %s178_s14 = int_to_ptr.vmem [resolvable:$true] %s177_s14 }
  0x28   :  { %169 = dma.hbm_to_vmem [thread:$0]  %s162_s28, 8192, %s164_s19, [#allocation17], %s4279_s1, %s4279_s1, %s4280_s8  }
  0x29   :  { %180 = dma.hbm_to_vmem [thread:$0]  %s176_s12, 32, %s178_s14, [#allocation20]  }
  0x2a   :  { %4256 = dma.done.wait [#allocation3], 8192  }
  0x2b   :  { %4257 = vsyncadd [#allocation3], 4294959104 }
  0x2c   :  { %4258 = dma.done.wait [#allocation5], 8256  }
  0x2d   :  { %4259 = vsyncadd [#allocation5], 4294959040 }
  0x2e   :  { %4260 = dma.done.wait [#allocation8], 48  }
  0x2f   :  { %4261 = vsyncadd [#allocation8], 4294967248 }
  0x30   :  { %4262 = dma.done.wait [#allocation11], 1056  }
  0x31   :  { %4263 = vsyncadd [#allocation11], 4294966240 }
  0x32   :  { %4264 = dma.done.wait [#allocation14], 8224  }
  0x33   :  { %4265 = vsyncadd [#allocation14], 4294959072 }
  0x34   :  { %4266 = dma.done.wait [#allocation17], 8256  }
  0x35   :  { %4267 = vsyncadd [#allocation17], 4294959040 }
  0x36   :  { %4268 = dma.done.wait [#allocation20], 32  }
  0x37   :  { %4269 = vsyncadd [#allocation20], 4294967264  ;;  %v2693_v0 = vld [vmem:[#allocation2 + $0xe0] sm:$0xf]  ;;  %v3699_v1 = vld [vmem:[#allocation2 + $0xec] sm:$0xf0] }
  0x38   :  { %v2821_v2 = vld [vmem:[#allocation2 + $0x1e0] sm:$0xf]  ;;  %v2694_v3 = vor.u32 %v3699_v1, %v2693_v0  ;;  %v3731_v4 = vld [vmem:[#allocation2 + $0x1ec] sm:$0xf0]  ;;  %v3697_v5 = vld [vmem:[#allocation2 + $0xe4] sm:$0xf] }
  0x39   :  { %v2695_v6 = vld [vmem:[#allocation2 + $0xf0] sm:$0xf0]  ;;  %v2822_v7 = vor.u32 %v3731_v4, %v2821_v2  ;;  %v3729_v9 = vld [vmem:[#allocation2 + $0x1e4] sm:$0xf]  ;;  %v2677_v11 = vld [vmem:[#allocation2 + $0xc0] sm:$0xf] }
  0x3a   :  { %v2698_v8 = vor.u32 %v3697_v5, %v2695_v6  ;;  %v2823_v10 = vld [vmem:[#allocation2 + $0x1f0] sm:$0xf0]  ;;  %631 = vmatpush.bf16.msra.mxu0 %v2694_v3  ;;  %v3695_v13 = vld [vmem:[#allocation2 + $0xcc] sm:$0xf0]  ;;  %v2805_v14 = vld [vmem:[#allocation2 + $0x1c0] sm:$0xf] }
  0x3b   :  { %v2826_v12 = vor.u32 %v3729_v9, %v2823_v10  ;;  %v3727_v15 = vld [vmem:[#allocation2 + $0x1cc] sm:$0xf0]  ;;  %644 = vmatpush.bf16.msra.mxu1 %v2822_v7  ;;  %v2678_v16 = vor.u32 %v3695_v13, %v2677_v11  ;;  %v3693_v18 = vld [vmem:[#allocation2 + $0xc4] sm:$0xf]  ;;  %v2679_v19 = vld [vmem:[#allocation2 + $0xd0] sm:$0xf0] }
  0x3c   :  { %657 = vmatpush.bf16.msra.mxu2 %v2698_v8  ;;  %v2806_v17 = vor.u32 %v3727_v15, %v2805_v14  ;;  %v3725_v20 = vld [vmem:[#allocation2 + $0x1c4] sm:$0xf]  ;;  %v2682_v21 = vor.u32 %v3693_v18, %v2679_v19  ;;  %v2807_v22 = vld [vmem:[#allocation2 + $0x1d0] sm:$0xf0]  ;;  %v2661_v23 = vld [vmem:[#allocation2 + $0xa0] sm:$0xf] }
  0x3d   :  { %670 = vmatpush.bf16.msra.mxu3 %v2826_v12  ;;  %v3691_v24 = vld [vmem:[#allocation2 + $0xac] sm:$0xf0]  ;;  %v2810_v25 = vor.u32 %v3725_v20, %v2807_v22  ;;  %v2789_v26 = vld [vmem:[#allocation2 + $0x1a0] sm:$0xf]  ;;  %v3689_v28 = vld [vmem:[#allocation2 + $0xa4] sm:$0xf] }
  0x3e   :  { %v3723_v27 = vld [vmem:[#allocation2 + $0x1ac] sm:$0xf0]  ;;  %632 = vmatpush.bf16.msra.mxu0 %v2678_v16  ;;  %v2662_v29 = vor.u32 %v3691_v24, %v2661_v23  ;;  %v2663_v30 = vld [vmem:[#allocation2 + $0xb0] sm:$0xf0]  ;;  %v3721_v31 = vld [vmem:[#allocation2 + $0x1a4] sm:$0xf] }
  0x3f   :  { %v2791_v32 = vld [vmem:[#allocation2 + $0x1b0] sm:$0xf0]  ;;  %645 = vmatpush.bf16.msra.mxu1 %v2806_v17  ;;  %v2790_v33 = vor.u32 %v3723_v27, %v2789_v26  ;;  %v2666_v34 = vor.u32 %v3689_v28, %v2663_v30  ;;  %v2645_v35 = vld [vmem:[#allocation2 + $0x80] sm:$0xf]  ;;  %v3687_v36 = vld [vmem:[#allocation2 + $0x8c] sm:$0xf0] }
  0x40   :  { %658 = vmatpush.bf16.msra.mxu2 %v2682_v21  ;;  %v2773_v37 = vld [vmem:[#allocation2 + $0x180] sm:$0xf]  ;;  %v2794_v38 = vor.u32 %v3721_v31, %v2791_v32  ;;  %v3719_v39 = vld [vmem:[#allocation2 + $0x18c] sm:$0xf0]  ;;  %v3685_v40 = vld [vmem:[#allocation2 + $0x84] sm:$0xf]  ;;  %v2646_v44 = vor.u32 %v3687_v36, %v2645_v35 }
  0x41   :  { %671 = vmatpush.bf16.msra.mxu3 %v2810_v25  ;;  %v2647_v41 = vld [vmem:[#allocation2 + $0x90] sm:$0xf0]  ;;  %v3717_v42 = vld [vmem:[#allocation2 + $0x184] sm:$0xf]  ;;  %v2774_v45 = vor.u32 %v3719_v39, %v2773_v37  ;;  %v2629_v47 = vld [vmem:[#allocation2 + $0x60] sm:$0xf] }
  0x42   :  { %v2775_v43 = vld [vmem:[#allocation2 + $0x190] sm:$0xf0]  ;;  %633 = vmatpush.bf16.msra.mxu0 %v2662_v29  ;;  %v2650_v46 = vor.u32 %v3685_v40, %v2647_v41  ;;  %v3683_v48 = vld [vmem:[#allocation2 + $0x6c] sm:$0xf0]  ;;  %v2757_v49 = vld [vmem:[#allocation2 + $0x160] sm:$0xf] }
  0x43   :  { %646 = vmatpush.bf16.msra.mxu1 %v2790_v33  ;;  %v2778_v50 = vor.u32 %v3717_v42, %v2775_v43  ;;  %v3715_v51 = vld [vmem:[#allocation2 + $0x16c] sm:$0xf0]  ;;  %v3681_v52 = vld [vmem:[#allocation2 + $0x64] sm:$0xf]  ;;  %v2631_v53 = vld [vmem:[#allocation2 + $0x70] sm:$0xf0]  ;;  %v2630_v56 = vor.u32 %v3683_v48, %v2629_v47 }
  0x44   :  { %659 = vmatpush.bf16.msra.mxu2 %v2666_v34  ;;  %v3713_v54 = vld [vmem:[#allocation2 + $0x164] sm:$0xf]  ;;  %v2759_v55 = vld [vmem:[#allocation2 + $0x170] sm:$0xf0]  ;;  %v2758_v57 = vor.u32 %v3715_v51, %v2757_v49  ;;  %v2634_v58 = vor.u32 %v3681_v52, %v2631_v53  ;;  %v2613_v59 = vld [vmem:[#allocation2 + $0x40] sm:$0xf] }
  0x45   :  { %672 = vmatpush.bf16.msra.mxu3 %v2794_v38  ;;  %v3679_v60 = vld [vmem:[#allocation2 + $0x4c] sm:$0xf0]  ;;  %v2741_v61 = vld [vmem:[#allocation2 + $0x140] sm:$0xf]  ;;  %v2762_v62 = vor.u32 %v3713_v54, %v2759_v55  ;;  %v3677_v0 = vld [vmem:[#allocation2 + $0x44] sm:$0xf] }
  0x46   :  { %634 = vmatpush.bf16.msra.mxu0 %v2646_v44  ;;  %v3711_v63 = vld [vmem:[#allocation2 + $0x14c] sm:$0xf0]  ;;  %v2615_v1 = vld [vmem:[#allocation2 + $0x50] sm:$0xf0]  ;;  %v3709_v2 = vld [vmem:[#allocation2 + $0x144] sm:$0xf]  ;;  %v2614_v4 = vor.u32 %v3679_v60, %v2613_v59 }
  0x47   :  { %647 = vmatpush.bf16.msra.mxu1 %v2774_v45  ;;  %v2743_v3 = vld [vmem:[#allocation2 + $0x150] sm:$0xf0]  ;;  %v2742_v5 = vor.u32 %v3711_v63, %v2741_v61  ;;  %v2618_v6 = vor.u32 %v3677_v0, %v2615_v1  ;;  %v2597_v7 = vld [vmem:[#allocation2 + $0x20] sm:$0xf]  ;;  %v3675_v8 = vld [vmem:[#allocation2 + $0x2c] sm:$0xf0] }
  0x48   :  { %660 = vmatpush.bf16.msra.mxu2 %v2650_v46  ;;  %v2725_v9 = vld [vmem:[#allocation2 + $0x120] sm:$0xf]  ;;  %v2746_v10 = vor.u32 %v3709_v2, %v2743_v3  ;;  %v3707_v11 = vld [vmem:[#allocation2 + $0x12c] sm:$0xf0]  ;;  %v3673_v12 = vld [vmem:[#allocation2 + $0x24] sm:$0xf]  ;;  %v2598_v16 = vor.u32 %v3675_v8, %v2597_v7 }
  0x49   :  { %673 = vmatpush.bf16.msra.mxu3 %v2778_v50  ;;  %v2599_v13 = vld [vmem:[#allocation2 + $0x30] sm:$0xf0]  ;;  %v3705_v14 = vld [vmem:[#allocation2 + $0x124] sm:$0xf]  ;;  %v2581_v17 = vld [vmem:[#allocation2] sm:$0xf]  ;;  %v2726_v20 = vor.u32 %v3707_v11, %v2725_v9 }
  0x4a   :  { %635 = vmatpush.bf16.msra.mxu0 %v2630_v56  ;;  %v2727_v15 = vld [vmem:[#allocation2 + $0x130] sm:$0xf0]  ;;  %v3671_v18 = vld [vmem:[#allocation2 + $0xc] sm:$0xf0]  ;;  %v2709_v19 = vld [vmem:[#allocation2 + $0x100] sm:$0xf]  ;;  %v2602_v21 = vor.u32 %v3673_v12, %v2599_v13 }
  0x4b   :  { %648 = vmatpush.bf16.msra.mxu1 %v2758_v57  ;;  %v3703_v22 = vld [vmem:[#allocation2 + $0x10c] sm:$0xf0]  ;;  %v3669_v23 = vld [vmem:[#allocation2 + $0x4] sm:$0xf]  ;;  %s4657_s5 = sld [smem:[#allocation28_spill]]  ;;  %v2730_v25 = vor.u32 %v3705_v14, %v2727_v15  ;;  %v2582_v32 = vor.u32 %v3671_v18, %v2581_v17  ;;  %vm1414_vm0 = vcmask 261120  }
  0x4c   :  { %661 = vmatpush.bf16.msra.mxu2 %v2634_v58  ;;  %v2583_v26 = vld [vmem:[#allocation2 + $0x10] sm:$0xf0]  ;;  %v3701_v27 = vld [vmem:[#allocation2 + $0x104] sm:$0xf]  ;;  %v2701_v29 = vld [vmem:[#allocation2 + $0xe8] sm:$0xf]  ;;  %v2710_v37 = vor.u32 %v3703_v22, %v2709_v19 }
  0x4d   :  { %674 = vmatpush.bf16.msra.mxu3 %v2762_v62  ;;  %v2711_v28 = vld [vmem:[#allocation2 + $0x110] sm:$0xf0]  ;;  %v3700_v30 = vld [vmem:[#allocation2 + $0xf4] sm:$0xf0]  ;;  %v2829_v31 = vld [vmem:[#allocation2 + $0x1e8] sm:$0xf]  ;;  %v2586_v38 = vor.u32 %v3669_v23, %v2583_v26 }
  0x4e   :  { %636 = vmatpush.bf16.msra.mxu0 %v2614_v4  ;;  %v3732_v33 = vld [vmem:[#allocation2 + $0x1f4] sm:$0xf0]  ;;  %v3698_v34 = vld [vmem:[#allocation2 + $0xec] sm:$0xf]  ;;  %v2703_v35 = vld [vmem:[#allocation2 + $0xf8] sm:$0xf0]  ;;  %v2714_v42 = vor.u32 %v3701_v27, %v2711_v28  ;;  %v2702_v43 = vor.u32 %v3700_v30, %v2701_v29 }
  0x4f   :  { %649 = vmatpush.bf16.msra.mxu1 %v2742_v5  ;;  %v3730_v39 = vld [vmem:[#allocation2 + $0x1ec] sm:$0xf]  ;;  %v2831_v40 = vld [vmem:[#allocation2 + $0x1f8] sm:$0xf0]  ;;  %v2830_v44 = vor.u32 %v3732_v33, %v2829_v31  ;;  %v2706_v45 = vor.u32 %v3698_v34, %v2703_v35  ;;  %v2685_v46 = vld [vmem:[#allocation2 + $0xc8] sm:$0xf] }
  0x50   :  { %662 = vmatpush.bf16.msra.mxu2 %v2618_v6  ;;  %v3696_v47 = vld [vmem:[#allocation2 + $0xd4] sm:$0xf0]  ;;  %v2813_v48 = vld [vmem:[#allocation2 + $0x1c8] sm:$0xf]  ;;  %v2834_v49 = vor.u32 %v3730_v39, %v2831_v40  ;;  %v3694_v52 = vld [vmem:[#allocation2 + $0xcc] sm:$0xf] }
  0x51   :  { %v229_v24 = vld [vmem:[%s4657_s5] sm:$0xff]  ;;  %675 = vmatpush.bf16.msra.mxu3 %v2746_v10  ;;  %v3728_v51 = vld [vmem:[#allocation2 + $0x1d4] sm:$0xf0]  ;;  %v2687_v53 = vld [vmem:[#allocation2 + $0xd8] sm:$0xf0]  ;;  %v2686_v57 = vor.u32 %v3696_v47, %v2685_v46  ;;  %s4658_s12 = sld [smem:[#allocation29_spill]] }
  0x52   :  { %637 = vmatpush.bf16.msra.mxu0 %v2598_v16  ;;  %v305_v36 = vunpack.c.l.b16 %v229_v24  ;;  %v306_v41 = vunpack.c.h.b16 %v229_v24  ;;  %v3726_v55 = vld [vmem:[#allocation2 + $0x1cc] sm:$0xf]  ;;  %v2815_v56 = vld [vmem:[#allocation2 + $0x1d8] sm:$0xf0]  ;;  %v2814_v58 = vor.u32 %v3728_v51, %v2813_v48  ;;  %v2690_v59 = vor.u32 %v3694_v52, %v2687_v53  ;;  %v2669_v60 = vld [vmem:[#allocation2 + $0xa8] sm:$0xf] }
  0x53   :  { %650 = vmatpush.bf16.msra.mxu1 %v2726_v20  ;;  %v3692_v61 = vld [vmem:[#allocation2 + $0xb4] sm:$0xf0]  ;;  %v2797_v62 = vld [vmem:[#allocation2 + $0x1a8] sm:$0xf]  ;;  %v2818_v63 = vor.u32 %v3726_v55, %v2815_v56  ;;  %v3690_v1 = vld [vmem:[#allocation2 + $0xac] sm:$0xf] }
  0x54   :  { %663 = vmatpush.bf16.msra.mxu2 %v2602_v21  ;;  %v4435_v50 = vpack.c.b16 %v305_v36, %v305_v36  ;;  %v4437_v54 = vpack.c.b16 %v306_v41, %v306_v41  ;;  %v3724_v0 = vld [vmem:[#allocation2 + $0x1b4] sm:$0xf0]  ;;  %v2671_v2 = vld [vmem:[#allocation2 + $0xb8] sm:$0xf0]  ;;  %v3722_v3 = vld [vmem:[#allocation2 + $0x1ac] sm:$0xf]  ;;  %v2670_v5 = vor.u32 %v3692_v61, %v2669_v60 }
  0x55   :  { %676 = vmatpush.bf16.msra.mxu3 %v2730_v25  ;;  %v2799_v4 = vld [vmem:[#allocation2 + $0x1b8] sm:$0xf0]  ;;  %v2798_v6 = vor.u32 %v3724_v0, %v2797_v62  ;;  %v2674_v7 = vor.u32 %v3690_v1, %v2671_v2  ;;  %v2653_v8 = vld [vmem:[#allocation2 + $0x88] sm:$0xf]  ;;  %v3688_v9 = vld [vmem:[#allocation2 + $0x94] sm:$0xf0] }
  0x56   :  { %638 = vmatpush.bf16.msra.mxu0 %v2582_v32  ;;  %v2781_v10 = vld [vmem:[#allocation2 + $0x188] sm:$0xf]  ;;  %v2802_v11 = vor.u32 %v3722_v3, %v2799_v4  ;;  %v3720_v12 = vld [vmem:[#allocation2 + $0x194] sm:$0xf0]  ;;  %v3686_v13 = vld [vmem:[#allocation2 + $0x8c] sm:$0xf]  ;;  %v2654_v17 = vor.u32 %v3688_v9, %v2653_v8 }
  0x57   :  { %651 = vmatpush.bf16.msra.mxu1 %v2710_v37  ;;  %v2655_v14 = vld [vmem:[#allocation2 + $0x98] sm:$0xf0]  ;;  %v3718_v15 = vld [vmem:[#allocation2 + $0x18c] sm:$0xf]  ;;  %v2782_v18 = vor.u32 %v3720_v12, %v2781_v10  ;;  %v2637_v20 = vld [vmem:[#allocation2 + $0x68] sm:$0xf] }
  0x58   :  { %664 = vmatpush.bf16.msra.mxu2 %v2586_v38  ;;  %v2783_v16 = vld [vmem:[#allocation2 + $0x198] sm:$0xf0]  ;;  %v2658_v19 = vor.u32 %v3686_v13, %v2655_v14  ;;  %v3684_v21 = vld [vmem:[#allocation2 + $0x74] sm:$0xf0]  ;;  %v2765_v22 = vld [vmem:[#allocation2 + $0x168] sm:$0xf] }
  0x59   :  { %677 = vmatpush.bf16.msra.mxu3 %v2714_v42  ;;  %639 = vmatmul.bf16.vlgmr.msra.gmra.mxu0 %v4435_v50  ;;  %v2786_v23 = vor.u32 %v3718_v15, %v2783_v16  ;;  %v3716_v24 = vld [vmem:[#allocation2 + $0x174] sm:$0xf0]  ;;  %v3682_v25 = vld [vmem:[#allocation2 + $0x6c] sm:$0xf]  ;;  %v2639_v26 = vld [vmem:[#allocation2 + $0x78] sm:$0xf0]  ;;  %v2638_v29 = vor.u32 %v3684_v21, %v2637_v20 }
  0x5a   :  { %683 = vmatpush.bf16.msrb.mxu0 %v2702_v43  ;;  %652 = vmatmul.bf16.vlgmr.msra.gmra.mxu1 %v4437_v54  ;;  %v3714_v27 = vld [vmem:[#allocation2 + $0x16c] sm:$0xf]  ;;  %v2767_v28 = vld [vmem:[#allocation2 + $0x178] sm:$0xf0]  ;;  %v2766_v30 = vor.u32 %v3716_v24, %v2765_v22  ;;  %v2642_v31 = vor.u32 %v3682_v25, %v2639_v26  ;;  %v2621_v32 = vld [vmem:[#allocation2 + $0x48] sm:$0xf] }
  0x5b   :  { %696 = vmatpush.bf16.msrb.mxu1 %v2830_v44  ;;  %665 = vmatmul.bf16.vlgmr.msra.gmra.mxu2 %v4435_v50  ;;  %v3680_v33 = vld [vmem:[#allocation2 + $0x54] sm:$0xf0]  ;;  %v2749_v34 = vld [vmem:[#allocation2 + $0x148] sm:$0xf]  ;;  %v2770_v35 = vor.u32 %v3714_v27, %v2767_v28  ;;  %v3678_v37 = vld [vmem:[#allocation2 + $0x4c] sm:$0xf] }
  0x5c   :  { %709 = vmatpush.bf16.msrb.mxu2 %v2706_v45  ;;  %678 = vmatmul.bf16.vlgmr.msra.gmra.mxu3 %v4437_v54  ;;  %v3712_v36 = vld [vmem:[#allocation2 + $0x154] sm:$0xf0]  ;;  %v2623_v38 = vld [vmem:[#allocation2 + $0x58] sm:$0xf0]  ;;  %v3710_v39 = vld [vmem:[#allocation2 + $0x14c] sm:$0xf]  ;;  %v2622_v41 = vor.u32 %v3680_v33, %v2621_v32 }
  0x5d   :  { %722 = vmatpush.bf16.msrb.mxu3 %v2834_v49  ;;  %v2751_v40 = vld [vmem:[#allocation2 + $0x158] sm:$0xf0]  ;;  %v2750_v42 = vor.u32 %v3712_v36, %v2749_v34  ;;  %v2626_v43 = vor.u32 %v3678_v37, %v2623_v38  ;;  %v2605_v44 = vld [vmem:[#allocation2 + $0x28] sm:$0xf]  ;;  %v3676_v45 = vld [vmem:[#allocation2 + $0x34] sm:$0xf0] }
  0x5e   :  { %684 = vmatpush.bf16.msrb.mxu0 %v2686_v57  ;;  %v2733_v46 = vld [vmem:[#allocation2 + $0x128] sm:$0xf]  ;;  %v2754_v47 = vor.u32 %v3710_v39, %v2751_v40  ;;  %v3708_v48 = vld [vmem:[#allocation2 + $0x134] sm:$0xf0]  ;;  %v3674_v49 = vld [vmem:[#allocation2 + $0x2c] sm:$0xf]  ;;  %v2606_v55 = vor.u32 %v3676_v45, %v2605_v44 }
  0x5f   :  { %697 = vmatpush.bf16.msrb.mxu1 %v2814_v58  ;;  %v2607_v51 = vld [vmem:[#allocation2 + $0x38] sm:$0xf0]  ;;  %v3706_v52 = vld [vmem:[#allocation2 + $0x12c] sm:$0xf]  ;;  %v2589_v56 = vld [vmem:[#allocation2 + $0x8] sm:$0xf]  ;;  %v2734_v57 = vor.u32 %v3708_v48, %v2733_v46 }
  0x60   :  { %710 = vmatpush.bf16.msrb.mxu2 %v2690_v59  ;;  %v2735_v53 = vld [vmem:[#allocation2 + $0x138] sm:$0xf0]  ;;  %v2610_v58 = vor.u32 %v3674_v49, %v2607_v51  ;;  %v3672_v59 = vld [vmem:[#allocation2 + $0x14] sm:$0xf0]  ;;  %v2717_v60 = vld [vmem:[#allocation2 + $0x108] sm:$0xf] }
  0x61   :  { %723 = vmatpush.bf16.msrb.mxu3 %v2818_v63  ;;  %v3704_v61 = vld [vmem:[#allocation2 + $0x114] sm:$0xf0]  ;;  %v2738_v62 = vor.u32 %v3706_v52, %v2735_v53  ;;  %v3670_v63 = vld [vmem:[#allocation2 + $0xc] sm:$0xf]  ;;  %v2591_v0 = vld [vmem:[#allocation2 + $0x18] sm:$0xf0] }
  0x62   :  { %685 = vmatpush.bf16.msrb.mxu0 %v2670_v5  ;;  %v3702_v1 = vld [vmem:[#allocation2 + $0x10c] sm:$0xf]  ;;  %v2719_v2 = vld [vmem:[#allocation2 + $0x118] sm:$0xf0]  ;;  %v2893_v3 = vld [vmem:[#allocation6 + $0x70] sm:$0xf]  ;;  %v2590_v5 = vor.u32 %v3672_v59, %v2589_v56  ;;  %v2718_v8 = vor.u32 %v3704_v61, %v2717_v60  ;;  %v2594_v9 = vor.u32 %v3670_v63, %v2591_v0 }
  0x63   :  { %698 = vmatpush.bf16.msrb.mxu1 %v2798_v6  ;;  %v3748_v4 = vld [vmem:[#allocation6 + $0x74] sm:$0xf0]  ;;  %v2957_v6 = vld [vmem:[#allocation6 + $0xf0] sm:$0xf]  ;;  %v2722_v10 = vor.u32 %v3702_v1, %v2719_v2  ;;  %v2885_v14 = vld [vmem:[#allocation6 + $0x60] sm:$0xf] }
  0x64   :  { %711 = vmatpush.bf16.msrb.mxu2 %v2674_v7  ;;  %v3764_v7 = vld [vmem:[#allocation6 + $0xf4] sm:$0xf0]  ;;  %v3021_v12 = vld [vmem:[#allocation6 + $0x170] sm:$0xf]  ;;  %v3746_v15 = vld [vmem:[#allocation6 + $0x64] sm:$0xf0] }
  0x65   :  { %724 = vmatpush.bf16.msrb.mxu3 %v2802_v11  ;;  %v2894_v11 = vor.u32 %v3748_v4, %v2893_v3  ;;  %v3780_v13 = vld [vmem:[#allocation6 + $0x174] sm:$0xf0]  ;;  %v2958_v16 = vor.u32 %v3764_v7, %v2957_v6  ;;  %v2886_v20 = vor.u32 %v3746_v15, %v2885_v14  ;;  %v3013_v21 = vld [vmem:[#allocation6 + $0x160] sm:$0xf]  ;;  %v3778_v22 = vld [vmem:[#allocation6 + $0x164] sm:$0xf0] }
  0x66   :  { %686 = vmatpush.bf16.msrb.mxu0 %v2654_v17  ;;  %v2949_v17 = vld [vmem:[#allocation6 + $0xe0] sm:$0xf]  ;;  %v3744_v24 = vld [vmem:[#allocation6 + $0x54] sm:$0xf0]  ;;  %v2941_v26 = vld [vmem:[#allocation6 + $0xd0] sm:$0xf]  ;;  %v3014_v28 = vor.u32 %v3778_v22, %v3013_v21 }
  0x67   :  { %699 = vmatpush.bf16.msrb.mxu1 %v2782_v18  ;;  %v3762_v18 = vld [vmem:[#allocation6 + $0xe4] sm:$0xf0]  ;;  %v3760_v27 = vld [vmem:[#allocation6 + $0xd4] sm:$0xf0]  ;;  %v2933_v33 = vld [vmem:[#allocation6 + $0xc0] sm:$0xf] }
  0x68   :  { %712 = vmatpush.bf16.msrb.mxu2 %v2658_v19  ;;  %v3022_v19 = vor.u32 %v3780_v13, %v3021_v12  ;;  %v2950_v25 = vor.u32 %v3762_v18, %v2949_v17  ;;  %v2942_v32 = vor.u32 %v3760_v27, %v2941_v26  ;;  %v3758_v34 = vld [vmem:[#allocation6 + $0xc4] sm:$0xf0]  ;;  %v2861_v36 = vld [vmem:[#allocation6 + $0x30] sm:$0xf]  ;;  %v3756_v39 = vld [vmem:[#allocation6 + $0xb4] sm:$0xf0] }
  0x69   :  { %725 = vmatpush.bf16.msrb.mxu3 %v2786_v23  ;;  %v2877_v23 = vld [vmem:[#allocation6 + $0x50] sm:$0xf]  ;;  %v2934_v37 = vor.u32 %v3758_v34, %v2933_v33  ;;  %v2853_v40 = vld [vmem:[#allocation6 + $0x20] sm:$0xf]  ;;  %v3754_v44 = vld [vmem:[#allocation6 + $0xa4] sm:$0xf0] }
  0x6a   :  { %687 = vmatpush.bf16.msrb.mxu0 %v2638_v29  ;;  %v2878_v29 = vor.u32 %v3744_v24, %v2877_v23  ;;  %v2925_v38 = vld [vmem:[#allocation6 + $0xb0] sm:$0xf]  ;;  %v3752_v51 = vld [vmem:[#allocation6 + $0x94] sm:$0xf0]  ;;  %v2837_v53 = vld [vmem:[#allocation6] sm:$0xf] }
  0x6b   :  { %700 = vmatpush.bf16.msrb.mxu1 %v2766_v30  ;;  %v2869_v30 = vld [vmem:[#allocation6 + $0x40] sm:$0xf]  ;;  %v2845_v46 = vld [vmem:[#allocation6 + $0x10] sm:$0xf]  ;;  %v3747_v56 = vld [vmem:[#allocation6 + $0x74] sm:$0xf] }
  0x6c   :  { %713 = vmatpush.bf16.msrb.mxu2 %v2642_v31  ;;  %v3742_v31 = vld [vmem:[#allocation6 + $0x44] sm:$0xf0]  ;;  %v2909_v49 = vld [vmem:[#allocation6 + $0x90] sm:$0xf]  ;;  %v2901_v59 = vld [vmem:[#allocation6 + $0x80] sm:$0xf] }
  0x6d   :  { %726 = vmatpush.bf16.msrb.mxu3 %v2770_v35  ;;  %v2870_v35 = vor.u32 %v3742_v31, %v2869_v30  ;;  %v3750_v60 = vld [vmem:[#allocation6 + $0x84] sm:$0xf0]  ;;  %v3745_v0 = vld [vmem:[#allocation6 + $0x64] sm:$0xf]  ;;  %v2887_v1 = vld [vmem:[#allocation6 + $0x68] sm:$0xf0] }
  0x6e   :  { %688 = vmatpush.bf16.msrb.mxu0 %v2622_v41  ;;  %v3738_v41 = vld [vmem:[#allocation6 + $0x24] sm:$0xf0]  ;;  %v2902_v63 = vor.u32 %v3750_v60, %v2901_v59  ;;  %v2890_v2 = vor.u32 %v3745_v0, %v2887_v1  ;;  %v3085_v3 = vld [vmem:[#allocation6 + $0x1f0] sm:$0xf]  ;;  %v3796_v4 = vld [vmem:[#allocation6 + $0x1f4] sm:$0xf0] }
  0x6f   :  { %701 = vmatpush.bf16.msrb.mxu1 %v2750_v42  ;;  %v2926_v42 = vor.u32 %v3756_v39, %v2925_v38  ;;  %v2854_v45 = vor.u32 %v3738_v41, %v2853_v40  ;;  %v3086_v6 = vor.u32 %v3796_v4, %v3085_v3  ;;  %v2959_v7 = vld [vmem:[#allocation6 + $0xf8] sm:$0xf0]  ;;  %v3077_v15 = vld [vmem:[#allocation6 + $0x1e0] sm:$0xf]  ;;  %v3761_v17 = vld [vmem:[#allocation6 + $0xe4] sm:$0xf] }
  0x70   :  { %714 = vmatpush.bf16.msrb.mxu2 %v2626_v43  ;;  %v2917_v43 = vld [vmem:[#allocation6 + $0xa0] sm:$0xf]  ;;  %v2879_v13 = vld [vmem:[#allocation6 + $0x58] sm:$0xf0]  ;;  %v3774_v22 = vld [vmem:[#allocation6 + $0x144] sm:$0xf0] }
  0x71   :  { %727 = vmatpush.bf16.msrb.mxu3 %v2754_v47  ;;  %v3736_v47 = vld [vmem:[#allocation6 + $0x14] sm:$0xf0]  ;;  %v2918_v48 = vor.u32 %v3754_v44, %v2917_v43  ;;  %v2997_v21 = vld [vmem:[#allocation6 + $0x140] sm:$0xf]  ;;  %v3741_v23 = vld [vmem:[#allocation6 + $0x44] sm:$0xf] }
  0x72   :  { %689 = vmatpush.bf16.msrb.mxu0 %v2606_v55  ;;  %v2846_v52 = vor.u32 %v3736_v47, %v2845_v46  ;;  %v3734_v55 = vld [vmem:[#allocation6 + $0x4] sm:$0xf0]  ;;  %v2998_v24 = vor.u32 %v3774_v22, %v2997_v21  ;;  %v3069_v27 = vld [vmem:[#allocation6 + $0x1d0] sm:$0xf]  ;;  %v3759_v30 = vld [vmem:[#allocation6 + $0xd4] sm:$0xf] }
  0x73   :  { %702 = vmatpush.bf16.msrb.mxu1 %v2734_v57  ;;  %v2910_v57 = vor.u32 %v3752_v51, %v2909_v49  ;;  %v2838_v61 = vor.u32 %v3734_v55, %v2837_v53  ;;  %v2943_v31 = vld [vmem:[#allocation6 + $0xd8] sm:$0xf0]  ;;  %v2989_v33 = vld [vmem:[#allocation6 + $0x130] sm:$0xf]  ;;  %v3772_v34 = vld [vmem:[#allocation6 + $0x134] sm:$0xf0] }
  0x74   :  { %715 = vmatpush.bf16.msrb.mxu2 %v2610_v58  ;;  %v2895_v58 = vld [vmem:[#allocation6 + $0x78] sm:$0xf0]  ;;  %v3061_v38 = vld [vmem:[#allocation6 + $0x1c0] sm:$0xf]  ;;  %v3790_v39 = vld [vmem:[#allocation6 + $0x1c4] sm:$0xf0] }
  0x75   :  { %728 = vmatpush.bf16.msrb.mxu3 %v2738_v62  ;;  %v2898_v62 = vor.u32 %v3747_v56, %v2895_v58  ;;  %v3062_v40 = vor.u32 %v3790_v39, %v3061_v38  ;;  %v2935_v41 = vld [vmem:[#allocation6 + $0xc8] sm:$0xf0]  ;;  %v2981_v43 = vld [vmem:[#allocation6 + $0x120] sm:$0xf]  ;;  %v3770_v44 = vld [vmem:[#allocation6 + $0x124] sm:$0xf0] }
  0x76   :  { %690 = vmatpush.bf16.msrb.mxu0 %v2590_v5  ;;  %v3763_v5 = vld [vmem:[#allocation6 + $0xf4] sm:$0xf]  ;;  %v2982_v46 = vor.u32 %v3770_v44, %v2981_v43  ;;  %v2855_v47 = vld [vmem:[#allocation6 + $0x28] sm:$0xf0]  ;;  %v3053_v49 = vld [vmem:[#allocation6 + $0x1b0] sm:$0xf] }
  0x77   :  { %703 = vmatpush.bf16.msrb.mxu1 %v2718_v8  ;;  %v2962_v8 = vor.u32 %v3763_v5, %v2959_v7  ;;  %v3788_v51 = vld [vmem:[#allocation6 + $0x1b4] sm:$0xf0]  ;;  %v2927_v55 = vld [vmem:[#allocation6 + $0xb8] sm:$0xf0]  ;;  %v2973_v56 = vld [vmem:[#allocation6 + $0x110] sm:$0xf] }
  0x78   :  { %716 = vmatpush.bf16.msrb.mxu2 %v2594_v9  ;;  %v3005_v9 = vld [vmem:[#allocation6 + $0x150] sm:$0xf]  ;;  %v3054_v53 = vor.u32 %v3788_v51, %v3053_v49  ;;  %v3735_v60 = vld [vmem:[#allocation6 + $0x14] sm:$0xf]  ;;  %v3786_v0 = vld [vmem:[#allocation6 + $0x1a4] sm:$0xf0] }
  0x79   :  { %729 = vmatpush.bf16.msrb.mxu3 %v2722_v10  ;;  %691 = vmatmul.bf16.vlgmr.msrb.gmra.mxu0 %v4435_v50  ;;  %v3776_v10 = vld [vmem:[#allocation6 + $0x154] sm:$0xf0]  ;;  %v3753_v1 = vld [vmem:[#allocation6 + $0xa4] sm:$0xf]  ;;  %v2965_v5 = vld [vmem:[#allocation6 + $0x100] sm:$0xf] }
  0x7a   :  { %1133 = vmatpush.bf16.msra.mxu0 %v2894_v11  ;;  %704 = vmatmul.bf16.vlgmr.msrb.gmra.mxu1 %v4437_v54  ;;  %v3743_v11 = vld [vmem:[#allocation6 + $0x54] sm:$0xf]  ;;  %v3006_v12 = vor.u32 %v3776_v10, %v3005_v9  ;;  %v3733_v7 = vld [vmem:[#allocation6 + $0x4] sm:$0xf]  ;;  %v2839_v9 = vld [vmem:[#allocation6 + $0x8] sm:$0xf0] }
  0x7b   :  { %1146 = vmatpush.bf16.msra.mxu1 %v2958_v16  ;;  %717 = vmatmul.bf16.vlgmr.msrb.gmra.mxu2 %v4435_v50  ;;  %v3740_v50 = vld [vmem:[#allocation6 + $0x34] sm:$0xf0]  ;;  %v2882_v14 = vor.u32 %v3743_v11, %v2879_v13  ;;  %v3794_v16 = vld [vmem:[#allocation6 + $0x1e4] sm:$0xf0]  ;;  %v3779_v10 = vld [vmem:[#allocation6 + $0x174] sm:$0xf] }
  0x7c   :  { %730 = vmatmul.bf16.vlgmr.msrb.gmra.mxu3 %v4437_v54  ;;  %1159 = vmatpush.bf16.msra.mxu2 %v3022_v19  ;;  %v2862_v54 = vor.u32 %v3740_v50, %v2861_v36  ;;  %v3078_v18 = vor.u32 %v3794_v16, %v3077_v15  ;;  %v2951_v19 = vld [vmem:[#allocation6 + $0xe8] sm:$0xf0]  ;;  %v2990_v36 = vor.u32 %v3772_v34, %v2989_v33  ;;  %v2863_v50 = vld [vmem:[#allocation6 + $0x38] sm:$0xf0]  ;;  %v3784_v15 = vld [vmem:[#allocation6 + $0x194] sm:$0xf0] }
  0x7d   :  { %1172 = vmatpush.bf16.msra.mxu3 %v3086_v6  ;;  %v3766_v6 = vld [vmem:[#allocation6 + $0x104] sm:$0xf0]  ;;  %v3023_v11 = vld [vmem:[#allocation6 + $0x178] sm:$0xf0]  ;;  %v3751_v16 = vld [vmem:[#allocation6 + $0x94] sm:$0xf] }
  0x7e   :  { %1134 = vmatpush.bf16.msra.mxu0 %v2886_v20  ;;  %v2954_v20 = vor.u32 %v3761_v17, %v2951_v19  ;;  %v3026_v13 = vor.u32 %v3779_v10, %v3023_v11  ;;  %v3777_v21 = vld [vmem:[#allocation6 + $0x164] sm:$0xf]  ;;  %v3015_v22 = vld [vmem:[#allocation6 + $0x168] sm:$0xf0]  ;;  %v3775_v34 = vld [vmem:[#allocation6 + $0x154] sm:$0xf] }
  0x7f   :  { %1147 = vmatpush.bf16.msra.mxu1 %v2950_v25  ;;  %v2871_v25 = vld [vmem:[#allocation6 + $0x48] sm:$0xf0]  ;;  %v3771_v51 = vld [vmem:[#allocation6 + $0x134] sm:$0xf]  ;;  %v3785_v10 = vld [vmem:[#allocation6 + $0x1a4] sm:$0xf] }
  0x80   :  { %1160 = vmatpush.bf16.msra.mxu2 %v3014_v28  ;;  %v2874_v26 = vor.u32 %v3741_v23, %v2871_v25  ;;  %v3792_v28 = vld [vmem:[#allocation6 + $0x1d4] sm:$0xf0]  ;;  %v3029_v23 = vld [vmem:[#allocation6 + $0x180] sm:$0xf]  ;;  %v3782_v25 = vld [vmem:[#allocation6 + $0x184] sm:$0xf0] }
  0x81   :  { %1173 = vmatpush.bf16.msra.mxu3 %v3078_v18  ;;  %v2911_v18 = vld [vmem:[#allocation6 + $0x98] sm:$0xf0]  ;;  %v3079_v38 = vld [vmem:[#allocation6 + $0x1e8] sm:$0xf0] }
  0x82   :  { %1135 = vmatpush.bf16.msra.mxu0 %v2878_v29  ;;  %v3070_v29 = vor.u32 %v3792_v28, %v3069_v27  ;;  %v2914_v19 = vor.u32 %v3751_v16, %v2911_v18  ;;  %v2903_v27 = vld [vmem:[#allocation6 + $0x88] sm:$0xf0]  ;;  %v3030_v28 = vor.u32 %v3782_v25, %v3029_v23 }
  0x83   :  { %1148 = vmatpush.bf16.msra.mxu1 %v2942_v32  ;;  %v2946_v32 = vor.u32 %v3759_v30, %v2943_v31  ;;  %v3795_v30 = vld [vmem:[#allocation6 + $0x1f4] sm:$0xf]  ;;  %v3087_v31 = vld [vmem:[#allocation6 + $0x1f8] sm:$0xf0]  ;;  %v3031_v25 = vld [vmem:[#allocation6 + $0x188] sm:$0xf0] }
  0x84   :  { %1161 = vmatpush.bf16.msra.mxu2 %v3006_v12  ;;  %v2842_v12 = vor.u32 %v3733_v7, %v2839_v9  ;;  %v3090_v33 = vor.u32 %v3795_v30, %v3087_v31  ;;  %v2975_v9 = vld [vmem:[#allocation6 + $0x118] sm:$0xf0] }
  0x85   :  { %1174 = vmatpush.bf16.msra.mxu3 %v3070_v29 }
  0x86   :  { %1136 = vmatpush.bf16.msra.mxu0 %v2870_v35  ;;  %v3739_v35 = vld [vmem:[#allocation6 + $0x34] sm:$0xf] }
  0x87   :  { %1149 = vmatpush.bf16.msra.mxu1 %v2934_v37  ;;  %v2866_v37 = vor.u32 %v3739_v35, %v2863_v50  ;;  %v3007_v35 = vld [vmem:[#allocation6 + $0x158] sm:$0xf0] }
  0x88   :  { %1162 = vmatpush.bf16.msra.mxu2 %v2998_v24  ;;  %v3018_v24 = vor.u32 %v3777_v21, %v3015_v22  ;;  %v3039_v21 = vld [vmem:[#allocation6 + $0x198] sm:$0xf0] }
  0x89   :  { %1175 = vmatpush.bf16.msra.mxu3 %v3062_v40 }
  0x8a   :  { %1137 = vmatpush.bf16.msra.mxu0 %v2862_v54  ;;  %v3757_v54 = vld [vmem:[#allocation6 + $0xc4] sm:$0xf] }
  0x8b   :  { %1150 = vmatpush.bf16.msra.mxu1 %v2926_v42  ;;  %v2938_v42 = vor.u32 %v3757_v54, %v2935_v41  ;;  %v3773_v41 = vld [vmem:[#allocation6 + $0x144] sm:$0xf] }
  0x8c   :  { %1163 = vmatpush.bf16.msra.mxu2 %v2990_v36  ;;  %v3010_v36 = vor.u32 %v3775_v34, %v3007_v35 }
  0x8d   :  { %1176 = vmatpush.bf16.msra.mxu3 %v3054_v53 }
  0x8e   :  { %1138 = vmatpush.bf16.msra.mxu0 %v2854_v45  ;;  %v3737_v45 = vld [vmem:[#allocation6 + $0x24] sm:$0xf] }
  0x8f   :  { %1151 = vmatpush.bf16.msra.mxu1 %v2918_v48  ;;  %v2858_v48 = vor.u32 %v3737_v45, %v2855_v47  ;;  %v3071_v47 = vld [vmem:[#allocation6 + $0x1d8] sm:$0xf0] }
  0x90   :  { %1164 = vmatpush.bf16.msra.mxu2 %v2982_v46  ;;  %v3791_v46 = vld [vmem:[#allocation6 + $0x1d4] sm:$0xf] }
  0x91   :  { %v3074_v49 = vor.u32 %v3791_v46, %v3071_v47  ;;  %v3800_v46 = vld [vmem:[%s4640_s6 + $0x18] sm:$0xff] }
  0x92   :  { %1139 = vmatpush.bf16.msra.mxu0 %v2846_v52  ;;  %v3755_v52 = vld [vmem:[#allocation6 + $0xb4] sm:$0xf] }
  0x93   :  { %1152 = vmatpush.bf16.msra.mxu1 %v2910_v57  ;;  %v3768_v57 = vld [vmem:[#allocation6 + $0x114] sm:$0xf0]  ;;  %v2930_v58 = vor.u32 %v3755_v52, %v2927_v55  ;;  %v2991_v52 = vld [vmem:[#allocation6 + $0x138] sm:$0xf0] }
  0x94   :  { %v2974_v59 = vor.u32 %v3768_v57, %v2973_v56  ;;  %v2994_v56 = vor.u32 %v3771_v51, %v2991_v52  ;;  %v3812_v47 = vld [vmem:[%s4640_s6 + $0x78] sm:$0xff]  ;;  %v3811_v51 = vld [vmem:[%s4640_s6 + $0x70] sm:$0xff] }
  0x96   :  { %1140 = vmatpush.bf16.msra.mxu0 %v2838_v61  ;;  %v2847_v61 = vld [vmem:[#allocation6 + $0x18] sm:$0xf0]  ;;  %1165 = vmatpush.bf16.msra.mxu2 %v2974_v59 }
  0x97   :  { %1153 = vmatpush.bf16.msra.mxu1 %v2902_v63  ;;  %v2850_v63 = vor.u32 %v3735_v60, %v2847_v61  ;;  %v3789_v60 = vld [vmem:[#allocation6 + $0x1c4] sm:$0xf]  ;;  %v3063_v61 = vld [vmem:[#allocation6 + $0x1c8] sm:$0xf0] }
  0x9a   :  { %1185 = vmatpush.bf16.msrb.mxu0 %v2898_v62  ;;  %v3045_v62 = vld [vmem:[#allocation6 + $0x1a0] sm:$0xf] }
  0x9b   :  { %1198 = vmatpush.bf16.msrb.mxu1 %v2962_v8  ;;  %v3046_v3 = vor.u32 %v3786_v0, %v3045_v62  ;;  %v2966_v8 = vor.u32 %v3766_v6, %v2965_v5  ;;  %v3787_v5 = vld [vmem:[#allocation6 + $0x1b4] sm:$0xf]  ;;  %v3055_v6 = vld [vmem:[#allocation6 + $0x1b8] sm:$0xf0] }
  0x9c   :  { %v3058_v7 = vor.u32 %v3787_v5, %v3055_v6 }
  0x9d   :  { %1177 = vmatpush.bf16.msra.mxu3 %v3046_v3  ;;  %1166 = vmatpush.bf16.msra.mxu2 %v2966_v8  ;;  %v3767_v8 = vld [vmem:[#allocation6 + $0x114] sm:$0xf] }
  0x9e   :  { %1186 = vmatpush.bf16.msrb.mxu0 %v2890_v2  ;;  %v2919_v2 = vld [vmem:[#allocation6 + $0xa8] sm:$0xf0] }
  0x9f   :  { %1199 = vmatpush.bf16.msrb.mxu1 %v2954_v20  ;;  %v2922_v4 = vor.u32 %v3753_v1, %v2919_v2  ;;  %v4447_v20 = vld [vmem:[#allocation4] sm:$0xf]  ;;  %v3769_v1 = vld [vmem:[#allocation6 + $0x124] sm:$0xf]  ;;  %v2983_v2 = vld [vmem:[#allocation6 + $0x128] sm:$0xf0] }
  0xa0   :  { %v297_v45 = vperm.slane %v4447_v20, 1  ;;  %v2986_v3 = vor.u32 %v3769_v1, %v2983_v2  ;;  %v3806_v1 = vld [vmem:[%s4640_s6 + $0x48] sm:$0xff]  ;;  %v807_v2 = vld [vmem:[#allocation7] sm:$0x3] }
  0xa1   :  { %1211 = vmatpush.bf16.msrb.mxu2 %v3026_v13  ;;  %v3047_v13 = vld [vmem:[#allocation6 + $0x1a8] sm:$0xf0] }
  0xa2   :  { %1187 = vmatpush.bf16.msrb.mxu0 %v2882_v14  ;;  %v3037_v14 = vld [vmem:[#allocation6 + $0x190] sm:$0xf] }
  0xa3   :  { %1200 = vmatpush.bf16.msrb.mxu1 %v2946_v32  ;;  %v3038_v17 = vor.u32 %v3784_v15, %v3037_v14  ;;  %v296_v32 = vperm.slane %v4447_v20, 0  ;;  %v3765_v14 = vld [vmem:[#allocation6 + $0x104] sm:$0xf]  ;;  %v2967_v15 = vld [vmem:[#allocation6 + $0x108] sm:$0xf0] }
  0xa4   :  { %v2970_v22 = vor.u32 %v3765_v14, %v2967_v15  ;;  %v810_v15 = vperm.slane %v807_v2, 1 }
  0xa5   :  { %1178 = vmatpush.bf16.msra.mxu3 %v3038_v17  ;;  %1212 = vmatpush.bf16.msrb.mxu2 %v3018_v24  ;;  %v3050_v17 = vor.u32 %v3785_v10, %v3047_v13  ;;  %v3781_v24 = vld [vmem:[#allocation6 + $0x184] sm:$0xf] }
  0xa6   :  { %1188 = vmatpush.bf16.msrb.mxu0 %v2874_v26  ;;  %v3749_v26 = vld [vmem:[#allocation6 + $0x84] sm:$0xf] }
  0xa7   :  { %1201 = vmatpush.bf16.msrb.mxu1 %v2938_v42  ;;  %v2906_v29 = vor.u32 %v3749_v26, %v2903_v27  ;;  %v2999_v42 = vld [vmem:[#allocation6 + $0x148] sm:$0xf0]  ;;  %v3034_v26 = vor.u32 %v3781_v24, %v3031_v25  ;;  %v298_v27 = vperm.slane %v4447_v20, 2 }
  0xa8   :  { %v3002_v44 = vor.u32 %v3773_v41, %v2999_v42 }
  0xa9   :  { %1179 = vmatpush.bf16.msra.mxu3 %v3030_v28  ;;  %1213 = vmatpush.bf16.msrb.mxu2 %v3010_v36 }
  0xaa   :  { %1189 = vmatpush.bf16.msrb.mxu0 %v2866_v37  ;;  %v3793_v37 = vld [vmem:[#allocation6 + $0x1e4] sm:$0xf] }
  0xab   :  { %1202 = vmatpush.bf16.msrb.mxu1 %v2930_v58  ;;  %v3082_v40 = vor.u32 %v3793_v37, %v3079_v38 }
  0xad   :  { %1224 = vmatpush.bf16.msrb.mxu3 %v3090_v33  ;;  %1214 = vmatpush.bf16.msrb.mxu2 %v3002_v44  ;;  %v3802_v44 = vld [vmem:[%s4640_s6 + $0x28] sm:$0xff] }
  0xae   :  { %1190 = vmatpush.bf16.msrb.mxu0 %v2858_v48 }
  0xaf   :  { %1203 = vmatpush.bf16.msrb.mxu1 %v2922_v4 }
  0xb1   :  { %1225 = vmatpush.bf16.msrb.mxu3 %v3082_v40  ;;  %1215 = vmatpush.bf16.msrb.mxu2 %v2994_v56  ;;  %v3810_v56 = vld [vmem:[%s4640_s6 + $0x68] sm:$0xff] }
  0xb2   :  { %1191 = vmatpush.bf16.msrb.mxu0 %v2850_v63  ;;  %v3066_v63 = vor.u32 %v3789_v60, %v3063_v61  ;;  %v3808_v61 = vld [vmem:[%s4640_s6 + $0x58] sm:$0xff] }
  0xb3   :  { %1204 = vmatpush.bf16.msrb.mxu1 %v2914_v19  ;;  %v3783_v19 = vld [vmem:[#allocation6 + $0x194] sm:$0xf] }
  0xb4   :  { %v3042_v23 = vor.u32 %v3783_v19, %v3039_v21 }
  0xb5   :  { %1226 = vmatpush.bf16.msrb.mxu3 %v3074_v49  ;;  %1216 = vmatpush.bf16.msrb.mxu2 %v2986_v3  ;;  %v3799_v49 = vld [vmem:[%s4640_s6 + $0x10] sm:$0xff]  ;;  %v3805_v3 = vld [vmem:[%s4640_s6 + $0x40] sm:$0xff] }
  0xb6   :  { %1192 = vmatpush.bf16.msrb.mxu0 %v2842_v12  ;;  %v2978_v12 = vor.u32 %v3767_v8, %v2975_v9 }
  0xb7   :  { %1205 = vmatpush.bf16.msrb.mxu1 %v2906_v29 }
  0xb9   :  { %1227 = vmatpush.bf16.msrb.mxu3 %v3066_v63  ;;  %1217 = vmatpush.bf16.msrb.mxu2 %v2978_v12 }
  0xbd   :  { %1228 = vmatpush.bf16.msrb.mxu3 %v3058_v7  ;;  %1218 = vmatpush.bf16.msrb.mxu2 %v2970_v22 }
  0xc1   :  { %1229 = vmatpush.bf16.msrb.mxu3 %v3050_v17 }
  0xc5   :  { %1230 = vmatpush.bf16.msrb.mxu3 %v3042_v23 }
  0xc9   :  { %1231 = vmatpush.bf16.msrb.mxu3 %v3034_v26 }
  0xd6   :  { %v640_v50 = vpop.f32.mrf.mxu0 }
  0xd7   :  { %v641_v39 = vadd.f32 %v640_v50, %v296_v32  ;;  %v653_v54 = vpop.f32.mrf.mxu1  ;;  %v299_v32 = vperm.slane %v4447_v20, 3  ;;  %v3804_v20 = vld [vmem:[%s4640_s6 + $0x38] sm:$0xff] }
  0xd9   :  { %v654_v43 = vadd.f32 %v653_v54, %v641_v39 }
  0xdb   :  { %v735_v48 = vmax.f32 %v654_v43, 0.0  ;;  %v3803_v43 = vld [vmem:[%s4640_s6 + $0x30] sm:$0xff] }
  0xdd   :  { %v739_v53 = vpack.c.bf16 %v735_v48, %v735_v48 }
  0xde   :  { %v666_v55 = vpop.f32.mrf.mxu2  ;;  %v642_v59 = vpop.f32.mrf.mxu0 }
  0xdf   :  { %v667_v57 = vadd.f32 %v666_v55, %v297_v45  ;;  %v679_v58 = vpop.f32.mrf.mxu3  ;;  %1141 = vmatmul.bf16.vlgmr.msra.gmra.mxu0 %v739_v53  ;;  %v655_v62 = vpop.f32.mrf.mxu1  ;;  %v3801_v45 = vld [vmem:[%s4640_s6 + $0x20] sm:$0xff]  ;;  %v3798_v55 = vld [vmem:[%s4640_s6 + $0x8] sm:$0xff] }
  0xe0   :  { %1373 = vmatpush.bf16.msra.mxu0 %v3804_v20  ;;  %v3807_v62 = vld [vmem:[%s4640_s6 + $0x50] sm:$0xff]  ;;  %v1487_v20 = vld [vmem:[%s4644_s10 + $0xb8] sm:$0xff] }
  0xe1   :  { %v680_v0 = vadd.f32 %v679_v58, %v667_v57  ;;  %v3797_v57 = vld [vmem:[%s4640_s6] sm:$0xff] }
  0xe2   :  { %v3809_v58 = vld [vmem:[%s4640_s6 + $0x60] sm:$0xff] }
  0xe3   :  { %v736_v4 = vmax.f32 %v680_v0, 0.0 }
  0xe4   :  { %1374 = vmatpush.bf16.msra.mxu0 %v3803_v43 }
  0xe5   :  { %v740_v11 = vpack.c.bf16 %v736_v4, %v736_v4  ;;  %v809_v4 = vperm.slane %v807_v2, 0  ;;  %v1473_v2 = vld [vmem:[%s4644_s10 + $0x48] sm:$0xff] }
  0xe6   :  { %v668_v16 = vpop.f32.mrf.mxu2 }
  0xe7   :  { %1154 = vmatmul.bf16.vlgmr.msra.gmra.mxu1 %v740_v11  ;;  %v681_v18 = vpop.f32.mrf.mxu3 }
  0xe8   :  { %1375 = vmatpush.bf16.msra.mxu0 %v3802_v44  ;;  %1386 = vmatpush.bf16.msra.mxu1 %v3812_v47  ;;  %v1484_v44 = vld [vmem:[%s4644_s10 + $0xa0] sm:$0xff]  ;;  %v1483_v47 = vld [vmem:[%s4644_s10 + $0x98] sm:$0xff] }
  0xec   :  { %1376 = vmatpush.bf16.msra.mxu0 %v3801_v45  ;;  %1387 = vmatpush.bf16.msra.mxu1 %v3811_v51  ;;  %v1485_v45 = vld [vmem:[%s4644_s10 + $0xa8] sm:$0xff] }
  0xef   :  { %1193 = vmatmul.bf16.vlgmr.msrb.gmra.mxu0 %v739_v53 }
  0xf0   :  { %1377 = vmatpush.bf16.msra.mxu0 %v3800_v46  ;;  %1388 = vmatpush.bf16.msra.mxu1 %v3810_v56  ;;  %v1482_v46 = vld [vmem:[%s4644_s10 + $0x90] sm:$0xff] }
  0xf4   :  { %1378 = vmatpush.bf16.msra.mxu0 %v3799_v49  ;;  %1389 = vmatpush.bf16.msra.mxu1 %v3809_v58  ;;  %v3957_v49 = vld [vmem:[#allocation9] ss:$0 sm:$0xff]  ;;  %v1481_v58 = vld [vmem:[%s4644_s10 + $0x88] sm:$0xff] }
  0xf6   :  { %v692_v28 = vpop.f32.mrf.mxu0 }
  0xf7   :  { %v693_v29 = vadd.f32 %v692_v28, %v298_v27  ;;  %v705_v30 = vpop.f32.mrf.mxu1  ;;  %1206 = vmatmul.bf16.vlgmr.msrb.gmra.mxu1 %v740_v11  ;;  %v1407_v28 = vld [vmem:[#allocation10 + $0x38] sm:$0xff] }
  0xf8   :  { %1379 = vmatpush.bf16.msra.mxu0 %v3798_v55  ;;  %1390 = vmatpush.bf16.msra.mxu1 %v3808_v61  ;;  %v1476_v61 = vld [vmem:[%s4644_s10 + $0x60] sm:$0xff] }
  0xf9   :  { %v706_v31 = vadd.f32 %v705_v30, %v693_v29  ;;  %v1405_v29 = vld [vmem:[#allocation10 + $0x28] sm:$0xff]  ;;  %v1403_v30 = vld [vmem:[#allocation10 + $0x18] sm:$0xff] }
  0xfb   :  { %v737_v33 = vmax.f32 %v706_v31, 0.0  ;;  %v1406_v31 = vld [vmem:[#allocation10 + $0x30] sm:$0xff] }
  0xfc   :  { %1380 = vmatpush.bf16.msra.mxu0 %v3797_v57  ;;  %1391 = vmatpush.bf16.msra.mxu1 %v3807_v62  ;;  %v1480_v57 = vld [vmem:[%s4644_s10 + $0x80] sm:$0xff]  ;;  %v1477_v62 = vld [vmem:[%s4644_s10 + $0x68] sm:$0xff] }
  0xfd   :  { %v741_v34 = vpack.c.bf16 %v737_v33, %v737_v33  ;;  %v1402_v33 = vld [vmem:[#allocation10 + $0x10] sm:$0xff] }
  0xfe   :  { %v718_v35 = vpop.f32.mrf.mxu2  ;;  %v694_v37 = vpop.f32.mrf.mxu0 }
  0xff   :  { %v719_v36 = vadd.f32 %v718_v35, %v299_v32  ;;  %v731_v50 = vpop.f32.mrf.mxu3  ;;  %v707_v38 = vpop.f32.mrf.mxu1  ;;  %1167 = vmatmul.bf16.vlgmr.msra.gmra.mxu2 %v741_v34  ;;  %v1404_v32 = vld [vmem:[#allocation10 + $0x20] sm:$0xff]  ;;  %v1492_v37 = vld [vmem:[%s4644_s10 + $0xe0] sm:$0xff] }
 0x100   :  { %1392 = vmatpush.bf16.msra.mxu1 %v3806_v1  ;;  %1430 = vmatpush.msra.mxu2 %v1406_v31  ;;  %v1400_v35 = vld [vmem:[#allocation10] sm:$0xff]  ;;  %v1472_v1 = vld [vmem:[%s4644_s10 + $0x40] sm:$0xff] }
 0x101   :  { %v732_v39 = vadd.f32 %v731_v50, %v719_v36  ;;  %v1494_v36 = vld [vmem:[%s4644_s10 + $0xf0] sm:$0xff]  ;;  %v1495_v50 = vld [vmem:[%s4644_s10 + $0xf8] sm:$0xff]  ;;  %v1493_v38 = vld [vmem:[%s4644_s10 + $0xe8] sm:$0xff] }
 0x102   :  { %1431 = vmatpush.msra.mxu2 %v1404_v32  ;;  %v3257_v31 = vld [vmem:[#allocation15 + $0xd0] sm:$0xf0]  ;;  %v3869_v32 = vld [vmem:[#allocation15 + $0x1c4] sm:$0xf] }
 0x103   :  { %v738_v54 = vmax.f32 %v732_v39, 0.0  ;;  %v1490_v39 = vld [vmem:[%s4644_s10 + $0xd0] sm:$0xff] }
 0x104   :  { %1393 = vmatpush.bf16.msra.mxu1 %v3805_v3  ;;  %1432 = vmatpush.msra.mxu2 %v1402_v33  ;;  %v1470_v3 = vld [vmem:[%s4644_s10 + $0x30] sm:$0xff] }
 0x105   :  { %v742_v40 = vpack.c.bf16 %v738_v54, %v738_v54  ;;  %v1491_v54 = vld [vmem:[%s4644_s10 + $0xd8] sm:$0xff] }
 0x106   :  { %v720_v41 = vpop.f32.mrf.mxu2  ;;  %1433 = vmatpush.msra.mxu2 %v1400_v35  ;;  %v3239_v35 = vld [vmem:[#allocation15 + $0xa0] sm:$0xf] }
 0x107   :  { %v733_v42 = vpop.f32.mrf.mxu3  ;;  %1180 = vmatmul.bf16.vlgmr.msra.gmra.mxu3 %v742_v40  ;;  %v1489_v41 = vld [vmem:[%s4644_s10 + $0xc8] sm:$0xff] }
 0x108   :  { %1450 = vmatpush.msra.mxu3 %v1407_v28  ;;  %v1486_v42 = vld [vmem:[%s4644_s10 + $0xb0] sm:$0xff] }
 0x10a   :  { %1451 = vmatpush.msra.mxu3 %v1405_v29 }
 0x10c   :  { %1452 = vmatpush.msra.mxu3 %v1403_v30  ;;  %v3837_v30 = vld [vmem:[#allocation15 + $0xc4] sm:$0xf] }
 0x10d   :  { %v3260_v33 = vor.u32 %v3837_v30, %v3257_v31  ;;  %v3303_v30 = vld [vmem:[#allocation15 + $0x120] sm:$0xf] }
 0x10f   :  { %1219 = vmatmul.bf16.vlgmr.msrb.gmra.mxu2 %v741_v34  ;;  %v1401_v34 = vld [vmem:[#allocation10 + $0x8] sm:$0xff] }
 0x110   :  { %1453 = vmatpush.msra.mxu3 %v1401_v34  ;;  %1502 = vmatpush.msrb.mxu2 %v1494_v36  ;;  %v3385_v34 = vld [vmem:[#allocation15 + $0x1d0] sm:$0xf0]  ;;  %v3835_v36 = vld [vmem:[#allocation15 + $0xac] sm:$0xf0] }
 0x112   :  { %1503 = vmatpush.msrb.mxu2 %v1492_v37  ;;  %v3388_v37 = vor.u32 %v3869_v32, %v3385_v34  ;;  %v3851_v32 = vld [vmem:[#allocation15 + $0x12c] sm:$0xf0]  ;;  %v3177_v34 = vld [vmem:[#allocation15 + $0x30] sm:$0xf0] }
 0x114   :  { %1504 = vmatpush.msrb.mxu2 %v1490_v39  ;;  %v3867_v39 = vld [vmem:[#allocation15 + $0x1ac] sm:$0xf0] }
 0x117   :  { %1232 = vmatmul.bf16.vlgmr.msrb.gmra.mxu3 %v742_v40  ;;  %v1488_v40 = vld [vmem:[%s4644_s10 + $0xc0] sm:$0xff] }
 0x118   :  { %1522 = vmatpush.msrb.mxu3 %v1495_v50  ;;  %1505 = vmatpush.msrb.mxu2 %v1488_v40  ;;  %v1408_v50 = vld [vmem:[#allocation12] sm:$0x3]  ;;  %v3240_v40 = vor.u32 %v3835_v36, %v3239_v35  ;;  %v3849_v35 = vld [vmem:[#allocation15 + $0x124] sm:$0xf]  ;;  %v3305_v36 = vld [vmem:[#allocation15 + $0x130] sm:$0xf0] }
 0x11a   :  { %1523 = vmatpush.msrb.mxu3 %v1493_v38  ;;  %1506 = vmatpush.msrb.mxu2 %v1486_v42  ;;  %v3367_v38 = vld [vmem:[#allocation15 + $0x1a0] sm:$0xf]  ;;  %v3865_v42 = vld [vmem:[#allocation15 + $0x1a4] sm:$0xf] }
 0x11c   :  { %1524 = vmatpush.msrb.mxu3 %v1491_v54  ;;  %1507 = vmatpush.msrb.mxu2 %v1484_v44  ;;  %v3833_v54 = vld [vmem:[#allocation15 + $0xa4] sm:$0xf] }
 0x11e   :  { %1525 = vmatpush.msrb.mxu3 %v1489_v41  ;;  %1508 = vmatpush.msrb.mxu2 %v1482_v46  ;;  %v3241_v41 = vld [vmem:[#allocation15 + $0xb0] sm:$0xf0]  ;;  %v3831_v46 = vld [vmem:[#allocation15 + $0x8c] sm:$0xf0] }
 0x11f   :  { %v3244_v44 = vor.u32 %v3833_v54, %v3241_v41  ;;  %v3159_v54 = vld [vmem:[#allocation15] sm:$0xf]  ;;  %v3308_v41 = vor.u32 %v3849_v35, %v3305_v36  ;;  %v3233_v35 = vld [vmem:[#allocation15 + $0x98] sm:$0xf0] }
 0x120   :  { %1526 = vmatpush.msrb.mxu3 %v1487_v20  ;;  %1509 = vmatpush.msrb.mxu2 %v1480_v57  ;;  %v3369_v20 = vld [vmem:[#allocation15 + $0x1b0] sm:$0xf0]  ;;  %v1411_v57 = vperm.slane %v1408_v50, 1 }
 0x122   :  { %1527 = vmatpush.msrb.mxu3 %v1485_v45  ;;  %v3223_v45 = vld [vmem:[#allocation15 + $0x80] sm:$0xf] }
 0x124   :  { %1528 = vmatpush.msrb.mxu3 %v1483_v47  ;;  %v3351_v47 = vld [vmem:[#allocation15 + $0x180] sm:$0xf] }
 0x126   :  { %1529 = vmatpush.msrb.mxu3 %v1481_v58  ;;  %v3224_v58 = vor.u32 %v3831_v46, %v3223_v45  ;;  %v3845_v45 = vld [vmem:[#allocation15 + $0x104] sm:$0xf]  ;;  %v3289_v46 = vld [vmem:[#allocation15 + $0x110] sm:$0xf0] }
 0x15c   :  { %v1142_v48 = vpop.f32.mrf.mxu0 }
 0x15d   :  { %v1143_v6 = vadd.f32 %v1142_v48, %v809_v4  ;;  %v1471_v4 = vld [vmem:[%s4644_s10 + $0x38] sm:$0xff] }
 0x164   :  { %v1155_v52 = vpop.f32.mrf.mxu1  ;;  %v1144_v53 = vpop.f32.mrf.mxu0 }
 0x165   :  { %v1156_v8 = vadd.f32 %v1155_v52, %v1143_v6  ;;  %v1469_v6 = vld [vmem:[%s4644_s10 + $0x28] sm:$0xff] }
 0x16c   :  { %v1157_v59 = vpop.f32.mrf.mxu1  ;;  %v1194_v60 = vpop.f32.mrf.mxu0 }
 0x16d   :  { %v1195_v18 = vadd.f32 %v1194_v60, %v810_v15  ;;  %v1478_v59 = vld [vmem:[%s4644_s10 + $0x70] sm:$0xff]  ;;  %v1479_v60 = vld [vmem:[%s4644_s10 + $0x78] sm:$0xff] }
 0x16e   :  { %1510 = vmatpush.msrb.mxu2 %v1478_v59  ;;  %1530 = vmatpush.msrb.mxu3 %v1479_v60  ;;  %v3875_v15 = vld [vmem:[#allocation15 + $0x1ec] sm:$0xf0] }
 0x170   :  { %1511 = vmatpush.msrb.mxu2 %v1476_v61  ;;  %1531 = vmatpush.msrb.mxu3 %v1477_v62  ;;  %v3207_v61 = vld [vmem:[#allocation15 + $0x60] sm:$0xf]  ;;  %v3827_v62 = vld [vmem:[#allocation15 + $0x6c] sm:$0xf0] }
 0x174   :  { %v1207_v63 = vpop.f32.mrf.mxu1  ;;  %v1196_v0 = vpop.f32.mrf.mxu0 }
 0x175   :  { %v1208_v19 = vadd.f32 %v1207_v63, %v1195_v18  ;;  %v1474_v63 = vld [vmem:[%s4644_s10 + $0x50] sm:$0xff]  ;;  %v1475_v0 = vld [vmem:[%s4644_s10 + $0x58] sm:$0xff] }
 0x176   :  { %1512 = vmatpush.msrb.mxu2 %v1474_v63  ;;  %1532 = vmatpush.msrb.mxu3 %v1475_v0  ;;  %v3335_v63 = vld [vmem:[#allocation15 + $0x160] sm:$0xf] }
 0x178   :  { %1513 = vmatpush.msrb.mxu2 %v1472_v1  ;;  %1533 = vmatpush.msrb.mxu3 %v1473_v2  ;;  %v3859_v1 = vld [vmem:[#allocation15 + $0x16c] sm:$0xf0]  ;;  %v3825_v2 = vld [vmem:[#allocation15 + $0x64] sm:$0xf] }
 0x17a   :  { %1514 = vmatpush.msrb.mxu2 %v1470_v3  ;;  %1534 = vmatpush.msrb.mxu3 %v1471_v4  ;;  %v3209_v3 = vld [vmem:[#allocation15 + $0x70] sm:$0xf0] }
 0x17c   :  { %v1209_v5 = vpop.f32.mrf.mxu1  ;;  %1535 = vmatpush.msrb.mxu3 %v1469_v6  ;;  %v3857_v6 = vld [vmem:[#allocation15 + $0x164] sm:$0xf] }
 0x17d   :  { %v1468_v5 = vld [vmem:[%s4644_s10 + $0x20] sm:$0xff] }
 0x17e   :  { %1515 = vmatpush.msrb.mxu2 %v1468_v5 }
 0x182   :  { %v1168_v7 = vpop.f32.mrf.mxu2 }
 0x183   :  { %v1169_v9 = vadd.f32 %v1168_v7, %v1156_v8  ;;  %v1466_v7 = vld [vmem:[%s4644_s10 + $0x10] sm:$0xff]  ;;  %v1467_v8 = vld [vmem:[%s4644_s10 + $0x18] sm:$0xff] }
 0x184   :  { %1516 = vmatpush.msrb.mxu2 %v1466_v7  ;;  %1536 = vmatpush.msrb.mxu3 %v1467_v8  ;;  %v3337_v7 = vld [vmem:[#allocation15 + $0x170] sm:$0xf0] }
 0x18a   :  { %v1181_v10 = vpop.f32.mrf.mxu3  ;;  %v1170_v12 = vpop.f32.mrf.mxu2 }
 0x18b   :  { %v1182_v11 = vadd.f32 %v1181_v10, %v1169_v9  ;;  %v1464_v9 = vld [vmem:[%s4644_s10] sm:$0xff]  ;;  %v1465_v10 = vld [vmem:[%s4644_s10 + $0x8] sm:$0xff]  ;;  %v3843_v12 = vld [vmem:[#allocation15 + $0xec] sm:$0xf0] }
 0x18c   :  { %1517 = vmatpush.msrb.mxu2 %v1464_v9  ;;  %1537 = vmatpush.msrb.mxu3 %v1465_v10  ;;  %v3208_v10 = vor.u32 %v3827_v62, %v3207_v61  ;;  %v3409_v61 = vld [vmem:[#allocation15 + $0x1f8] sm:$0xf0] }
 0x18d   :  { %v1237_v13 = vmax.f32 %v1182_v11, 0.0  ;;  %v3271_v11 = vld [vmem:[#allocation15 + $0xe0] sm:$0xf] }
 0x18f   :  { %v1239_v14 = vpack.c.bf16 %v1237_v13, %v1237_v13  ;;  %v3399_v13 = vld [vmem:[#allocation15 + $0x1e0] sm:$0xf] }
 0x190   :  { %v3400_v18 = vor.u32 %v3875_v15, %v3399_v13  ;;  %v3212_v13 = vor.u32 %v3825_v2, %v3209_v3  ;;  %v3319_v15 = vld [vmem:[#allocation15 + $0x140] sm:$0xf]  ;;  %v3263_v3 = vld [vmem:[#allocation15 + $0xc8] sm:$0xf] }
 0x191   :  { %1381 = vmatmul.bf16.vlgmr.msra.gmra.mxu0 %v1239_v14  ;;  %v3272_v14 = vor.u32 %v3843_v12, %v3271_v11  ;;  %v3191_v11 = vld [vmem:[#allocation15 + $0x40] sm:$0xf]  ;;  %v3336_v12 = vor.u32 %v3859_v1, %v3335_v63  ;;  %v3292_v63 = vor.u32 %v3845_v45, %v3289_v46 }
 0x192   :  { %v1183_v16 = vpop.f32.mrf.mxu3  ;;  %v1220_v17 = vpop.f32.mrf.mxu2  ;;  %1953 = vmatpush.bf16.msrb.mxu1 %v3400_v18  ;;  %v3340_v18 = vor.u32 %v3857_v6, %v3337_v7  ;;  %v3872_v7 = vld [vmem:[#allocation15 + $0x1d4] sm:$0xf0] }
 0x193   :  { %v1221_v21 = vadd.f32 %v1220_v17, %v1208_v19  ;;  %v3841_v16 = vld [vmem:[#allocation15 + $0xe4] sm:$0xf]  ;;  %v3273_v17 = vld [vmem:[#allocation15 + $0xf0] sm:$0xf0]  ;;  %1940 = vmatpush.bf16.msrb.mxu0 %v3272_v14  ;;  %v3823_v14 = vld [vmem:[#allocation15 + $0x4c] sm:$0xf0] }
 0x194   :  { %v3276_v19 = vor.u32 %v3841_v16, %v3273_v17  ;;  %v3855_v16 = vld [vmem:[#allocation15 + $0x14c] sm:$0xf0] }
 0x19a   :  { %v1233_v22 = vpop.f32.mrf.mxu3  ;;  %v1222_v24 = vpop.f32.mrf.mxu2 }
 0x19b   :  { %v1234_v23 = vadd.f32 %v1233_v22, %v1221_v21  ;;  %v3873_v21 = vld [vmem:[#allocation15 + $0x1e4] sm:$0xf]  ;;  %v3401_v22 = vld [vmem:[#allocation15 + $0x1f0] sm:$0xf0] }
 0x19c   :  { %v3404_v24 = vor.u32 %v3873_v21, %v3401_v22  ;;  %v3193_v21 = vld [vmem:[#allocation15 + $0x50] sm:$0xf0]  ;;  %v3853_v22 = vld [vmem:[#allocation15 + $0x144] sm:$0xf] }
 0x19d   :  { %v1238_v25 = vmax.f32 %v1234_v23, 0.0  ;;  %v3255_v23 = vld [vmem:[#allocation15 + $0xc0] sm:$0xf] }
 0x19f   :  { %v1240_v26 = vpack.c.bf16 %v1238_v25, %v1238_v25  ;;  %v3839_v25 = vld [vmem:[#allocation15 + $0xcc] sm:$0xf0] }
 0x1a0   :  { %v3256_v28 = vor.u32 %v3839_v25, %v3255_v23  ;;  %v3321_v23 = vld [vmem:[#allocation15 + $0x150] sm:$0xf0]  ;;  %v3192_v25 = vor.u32 %v3823_v14, %v3191_v11  ;;  %v3870_v11 = vld [vmem:[#allocation15 + $0x1cc] sm:$0xf] }
 0x1a1   :  { %1394 = vmatmul.bf16.vlgmr.msra.gmra.mxu1 %v1240_v26  ;;  %v3383_v26 = vld [vmem:[#allocation15 + $0x1c0] sm:$0xf]  ;;  %v3324_v31 = vor.u32 %v3853_v22, %v3321_v23  ;;  %v3834_v22 = vld [vmem:[#allocation15 + $0xac] sm:$0xf]  ;;  %v3249_v23 = vld [vmem:[#allocation15 + $0xb8] sm:$0xf0] }
 0x1a2   :  { %v1235_v27 = vpop.f32.mrf.mxu3  ;;  %1941 = vmatpush.bf16.msrb.mxu0 %v3256_v28  ;;  %v3175_v28 = vld [vmem:[#allocation15 + $0x20] sm:$0xf] }
 0x1a3   :  { %v3871_v27 = vld [vmem:[#allocation15 + $0x1cc] sm:$0xf0] }
 0x1a4   :  { %v3384_v29 = vor.u32 %v3871_v27, %v3383_v26  ;;  %v3320_v26 = vor.u32 %v3855_v16, %v3319_v15  ;;  %v3247_v16 = vld [vmem:[#allocation15 + $0xa8] sm:$0xf] }
 0x1a6   :  { %1954 = vmatpush.bf16.msrb.mxu1 %v3384_v29  ;;  %1942 = vmatpush.bf16.msrb.mxu0 %v3240_v40  ;;  %v3819_v29 = vld [vmem:[#allocation15 + $0x2c] sm:$0xf0] }
 0x1a7   :  { %v3815_v40 = vld [vmem:[#allocation15 + $0xc] sm:$0xf0] }
 0x1aa   :  { %1943 = vmatpush.bf16.msrb.mxu0 %v3224_v58 }
 0x1ae   :  { %1944 = vmatpush.bf16.msrb.mxu0 %v3208_v10  ;;  %v3265_v10 = vld [vmem:[#allocation15 + $0xd8] sm:$0xf0] }
 0x1b2   :  { %1945 = vmatpush.bf16.msrb.mxu0 %v3192_v25  ;;  %v3252_v25 = vor.u32 %v3834_v22, %v3249_v23 }
 0x20e   :  { %v1382_v43 = vpop.f32.mrf.mxu0 }
 0x20f   :  { %v1383_v51 = vadd.f32 %v3957_v49, %v1382_v43  ;;  %v3368_v43 = vor.u32 %v3867_v39, %v3367_v38  ;;  %v3863_v49 = vld [vmem:[#allocation15 + $0x18c] sm:$0xf0]  ;;  %v3304_v38 = vor.u32 %v3851_v32, %v3303_v30  ;;  %v3832_v30 = vld [vmem:[#allocation15 + $0x94] sm:$0xf0] }
 0x210   :  { %v3352_v59 = vor.u32 %v3863_v49, %v3351_v47  ;;  %v3279_v49 = vld [vmem:[#allocation15 + $0xe8] sm:$0xf] }
 0x211   :  { %1955 = vmatpush.bf16.msrb.mxu1 %v3368_v43  ;;  %v3813_v43 = vld [vmem:[#allocation15 + $0x4] sm:$0xf] }
 0x215   :  { %1956 = vmatpush.bf16.msrb.mxu1 %v3352_v59 }
 0x216   :  { %v1384_v48 = vpop.f32.mrf.mxu0 }
 0x217   :  { %v3372_v48 = vor.u32 %v3865_v42, %v3369_v20  ;;  %v3287_v42 = vld [vmem:[#allocation15 + $0x100] sm:$0xf]  ;;  %v3847_v20 = vld [vmem:[#allocation15 + $0x10c] sm:$0xf0] }
 0x218   :  { %v3288_v58 = vor.u32 %v3847_v20, %v3287_v42  ;;  %v3860_v20 = vld [vmem:[#allocation15 + $0x174] sm:$0xf0] }
 0x219   :  { %1957 = vmatpush.bf16.msrb.mxu1 %v3336_v12  ;;  %v3393_v12 = vld [vmem:[#allocation15 + $0x1d8] sm:$0xf0] }
 0x21a   :  { %v3396_v15 = vor.u32 %v3870_v11, %v3393_v12  ;;  %v3167_v12 = vld [vmem:[#allocation15 + $0x8] sm:$0xf] }
 0x21d   :  { %1958 = vmatpush.bf16.msrb.mxu1 %v3320_v26  ;;  %v3866_v26 = vld [vmem:[#allocation15 + $0x1ac] sm:$0xf] }
 0x21e   :  { %v1395_v52 = vpop.f32.mrf.mxu1 }
 0x21f   :  { %v1396_v53 = vadd.f32 %v1395_v52, %v1383_v51  ;;  %v3829_v51 = vld [vmem:[#allocation15 + $0x84] sm:$0xf]  ;;  %v3225_v52 = vld [vmem:[#allocation15 + $0x90] sm:$0xf0] }
 0x220   :  { %v3228_v60 = vor.u32 %v3829_v51, %v3225_v52  ;;  %v3844_v51 = vld [vmem:[#allocation15 + $0xf4] sm:$0xf0]  ;;  %v3407_v52 = vld [vmem:[#allocation15 + $0x1e8] sm:$0xf] }
 0x221   :  { %v1399_v55 = vmax.f32 %v1396_v53, 0.0  ;;  %v3861_v53 = vld [vmem:[#allocation15 + $0x184] sm:$0xf]  ;;  %1959 = vmatpush.bf16.msrb.mxu1 %v3304_v38  ;;  %v3361_v38 = vld [vmem:[#allocation15 + $0x198] sm:$0xf0] }
 0x223   :  { %3155 = vmatmul.msk.f32.vlgmr.msra.gmra.mxu2 %vm1414_vm0, %v1399_v55  ;;  %3156 = vmatmul.msk.f32.vlgmr.msra.gmra.mxu3 %vm1414_vm0, %v1399_v55  ;;  %v3353_v55 = vld [vmem:[#allocation15 + $0x190] sm:$0xf0] }
 0x224   :  { %1966 = vmatpush.bf16.msra.mxu2 %v3276_v19  ;;  %1979 = vmatpush.bf16.msra.mxu3 %v3404_v24  ;;  %v3356_v0 = vor.u32 %v3861_v53, %v3353_v55  ;;  %v3821_v19 = vld [vmem:[#allocation15 + $0x44] sm:$0xf]  ;;  %v3876_v55 = vld [vmem:[#allocation15 + $0x1f4] sm:$0xf0] }
 0x225   :  { %v3196_v27 = vor.u32 %v3821_v19, %v3193_v21  ;;  %v3408_v1 = vor.u32 %v3876_v55, %v3407_v52  ;;  %1960 = vmatpush.bf16.msrb.mxu1 %v3288_v58  ;;  %v3868_v21 = vld [vmem:[#allocation15 + $0x1b4] sm:$0xf0]  ;;  %v3822_v58 = vld [vmem:[#allocation15 + $0x4c] sm:$0xf] }
 0x226   :  { %v1397_v56 = vpop.f32.mrf.mxu1  ;;  %v3824_v52 = vld [vmem:[#allocation15 + $0x54] sm:$0xf0] }
 0x227   :  { %v1410_v56 = vperm.slane %v1408_v50, 0  ;;  %v3176_v50 = vor.u32 %v3819_v29, %v3175_v28  ;;  %v3231_v29 = vld [vmem:[#allocation15 + $0x88] sm:$0xf]  ;;  %v3856_v55 = vld [vmem:[#allocation15 + $0x154] sm:$0xf0] }
 0x228   :  { %1967 = vmatpush.bf16.msra.mxu2 %v3260_v33  ;;  %1980 = vmatpush.bf16.msra.mxu3 %v3388_v37  ;;  %v3817_v33 = vld [vmem:[#allocation15 + $0x24] sm:$0xf]  ;;  %v1461_v37 = vld [vmem:[%s4658_s12] sm:$0xff]  ;;  %v3232_v32 = vor.u32 %v3832_v30, %v3231_v29 }
 0x229   :  { %v3180_v39 = vor.u32 %v3817_v33, %v3177_v34  ;;  %1946 = vmatpush.bf16.msrb.mxu0 %v3176_v50  ;;  %2005 = vmatpush.bf16.msra.mxu1 %v3408_v1  ;;  %v3864_v33 = vld [vmem:[#allocation15 + $0x194] sm:$0xf0]  ;;  %v3830_v34 = vld [vmem:[#allocation15 + $0x8c] sm:$0xf] }
 0x22a   :  { %v3236_v50 = vor.u32 %v3830_v34, %v3233_v35  ;;  %v3535_v34 = vld [vmem:[#allocation18 + $0xf0] sm:$0xf]  ;;  %v3908_v35 = vld [vmem:[#allocation18 + $0xf4] sm:$0xf0] }
 0x22c   :  { %1968 = vmatpush.bf16.msra.mxu2 %v3244_v44  ;;  %1981 = vmatpush.bf16.msra.mxu3 %v3372_v48  ;;  %v3161_v44 = vld [vmem:[#allocation15 + $0x10] sm:$0xf0]  ;;  %v3160_v48 = vor.u32 %v3815_v40, %v3159_v54  ;;  %v3215_v54 = vld [vmem:[#allocation15 + $0x68] sm:$0xf]  ;;  %v3828_v40 = vld [vmem:[#allocation15 + $0x74] sm:$0xf0] }
 0x22d   :  { %v3164_v59 = vor.u32 %v3813_v43, %v3161_v44  ;;  %v3216_v42 = vor.u32 %v3828_v40, %v3215_v54  ;;  %v3826_v43 = vld [vmem:[#allocation15 + $0x6c] sm:$0xf]  ;;  %v3217_v44 = vld [vmem:[#allocation15 + $0x78] sm:$0xf0] }
 0x22e   :  { %1947 = vmatpush.bf16.msrb.mxu0 %v3160_v48  ;;  %v3220_v46 = vor.u32 %v3826_v43, %v3217_v44  ;;  %v3345_v48 = vld [vmem:[#allocation15 + $0x178] sm:$0xf0]  ;;  %v3890_v43 = vld [vmem:[#allocation18 + $0x64] sm:$0xf0]  ;;  %v3536_v44 = vor.u32 %v3908_v35, %v3535_v34  ;;  %v3423_v34 = vld [vmem:[#allocation18 + $0x10] sm:$0xf] }
 0x22f   :  { %v3940_v54 = vld [vmem:[#allocation18 + $0x1f4] sm:$0xf0] }
 0x230   :  { %1969 = vmatpush.bf16.msra.mxu2 %v3228_v60  ;;  %1982 = vmatpush.bf16.msra.mxu3 %v3356_v0  ;;  %v3874_v60 = vld [vmem:[#allocation15 + $0x1ec] sm:$0xf]  ;;  %v3280_v0 = vor.u32 %v3844_v51, %v3279_v49  ;;  %v3199_v49 = vld [vmem:[#allocation15 + $0x48] sm:$0xf] }
 0x231   :  { %v3412_v6 = vor.u32 %v3874_v60, %v3409_v61  ;;  %v3854_v60 = vld [vmem:[#allocation15 + $0x14c] sm:$0xf] }
 0x232   :  { %1992 = vmatpush.bf16.msra.mxu0 %v3280_v0  ;;  %v3820_v0 = vld [vmem:[#allocation15 + $0x34] sm:$0xf0] }
 0x234   :  { %1970 = vmatpush.bf16.msra.mxu2 %v3212_v13  ;;  %1983 = vmatpush.bf16.msra.mxu3 %v3340_v18  ;;  %v3375_v18 = vld [vmem:[#allocation15 + $0x1a8] sm:$0xf] }
 0x238   :  { %1971 = vmatpush.bf16.msra.mxu2 %v3196_v27  ;;  %1984 = vmatpush.bf16.msra.mxu3 %v3324_v31  ;;  %v3377_v27 = vld [vmem:[#allocation15 + $0x1b8] sm:$0xf0]  ;;  %v3359_v31 = vld [vmem:[#allocation15 + $0x188] sm:$0xf] }
 0x239   :  { %v3380_v28 = vor.u32 %v3866_v26, %v3377_v27  ;;  %v3360_v36 = vor.u32 %v3864_v33, %v3359_v31  ;;  %v3892_v33 = vld [vmem:[#allocation18 + $0x74] sm:$0xf0] }
 0x23c   :  { %1972 = vmatpush.bf16.msra.mxu2 %v3180_v39  ;;  %1985 = vmatpush.bf16.msra.mxu3 %v3308_v41  ;;  %v3343_v41 = vld [vmem:[#allocation15 + $0x168] sm:$0xf] }
 0x23d   :  { %v3344_v45 = vor.u32 %v3860_v20, %v3343_v41  ;;  %v3463_v20 = vld [vmem:[#allocation18 + $0x60] sm:$0xf] }
 0x240   :  { %1973 = vmatpush.bf16.msra.mxu2 %v3164_v59  ;;  %1986 = vmatpush.bf16.msra.mxu3 %v3292_v63  ;;  %v3201_v59 = vld [vmem:[#allocation15 + $0x58] sm:$0xf0]  ;;  %v3183_v63 = vld [vmem:[#allocation15 + $0x28] sm:$0xf] }
 0x241   :  { %v3204_v61 = vor.u32 %v3822_v58, %v3201_v59  ;;  %v3519_v59 = vld [vmem:[#allocation18 + $0xd0] sm:$0xf] }
 0x2a6   :  { %v1435_v4 = vpop.f32.mrf.mxu2  ;;  %v1455_v5 = vpop.f32.mrf.mxu3 }
 0x2a7   :  { %v4597_v8 = vadd.f32 %v1435_v4, %v1410_v56  ;;  %v1456_v9 = vadd.f32 %v1455_v5, %v1411_v57  ;;  %v3842_v56 = vld [vmem:[#allocation15 + $0xec] sm:$0xf]  ;;  %v3281_v57 = vld [vmem:[#allocation15 + $0xf8] sm:$0xf0]  ;;  %v3840_v4 = vld [vmem:[#allocation15 + $0xd4] sm:$0xf0] }
 0x2a8   :  { %v3284_v2 = vor.u32 %v3842_v56, %v3281_v57  ;;  %v3391_v5 = vld [vmem:[#allocation15 + $0x1c8] sm:$0xf]  ;;  %v3200_v56 = vor.u32 %v3824_v52, %v3199_v49  ;;  %v3655_v52 = vld [vmem:[#allocation18 + $0x1e0] sm:$0xf] }
 0x2a9   :  { %2558 = vst [vmem:[%s4651_s17] sm:$0xff] %v4597_v8  ;;  %v1458_v17 = vmul.f32 0.5, %v1456_v9  ;;  %v3392_v13 = vor.u32 %v3872_v7, %v3391_v5  ;;  %v3184_v5 = vor.u32 %v3820_v0, %v3183_v63  ;;  %v3850_v7 = vld [vmem:[#allocation15 + $0x12c] sm:$0xf]  ;;  %v3920_v0 = vld [vmem:[#allocation18 + $0x154] sm:$0xf0] }
 0x2aa   :  { %2559 = vst [vmem:[%s4652_s18] sm:$0xff] %v1456_v9  ;;  %v3838_v9 = vld [vmem:[#allocation15 + $0xcc] sm:$0xf] }
 0x2ab   :  { %v1459_v24 = vmul.f32 1.442695, %v1458_v17  ;;  %v3268_v14 = vor.u32 %v3838_v9, %v3265_v10  ;;  %2006 = vmatpush.bf16.msra.mxu1 %v3392_v13  ;;  %v3836_v17 = vld [vmem:[#allocation15 + $0xb4] sm:$0xf0]  ;;  %v3313_v9 = vld [vmem:[#allocation15 + $0x138] sm:$0xf0] }
 0x2ac   :  { %v3248_v19 = vor.u32 %v3836_v17, %v3247_v16  ;;  %v3295_v13 = vld [vmem:[#allocation15 + $0x108] sm:$0xf]  ;;  %v3814_v16 = vld [vmem:[#allocation15 + $0xc] sm:$0xf]  ;;  %v3169_v17 = vld [vmem:[#allocation15 + $0x18] sm:$0xf0] }
 0x2ad   :  { %3958 = vpow2.f32 %v1459_v24  ;;  %v3376_v24 = vor.u32 %v3868_v21, %v3375_v18  ;;  %v3846_v18 = vld [vmem:[#allocation15 + $0x10c] sm:$0xf]  ;;  %v3172_v23 = vor.u32 %v3814_v16, %v3169_v17  ;;  %v3439_v16 = vld [vmem:[#allocation18 + $0x30] sm:$0xf] }
 0x2af   :  { %2007 = vmatpush.bf16.msra.mxu1 %v3376_v24 }
 0x2b3   :  { %v3959_v47 = vpop.eup %3958  ;;  %2008 = vmatpush.bf16.msra.mxu1 %v3360_v36  ;;  %v3599_v36 = vld [vmem:[#allocation18 + $0x170] sm:$0xf] }
 0x2b4   :  { %v1462_v53 = vmul.f32 %v3959_v47, %v1461_v37  ;;  %v3862_v37 = vld [vmem:[#allocation15 + $0x18c] sm:$0xf] }
 0x2b5   :  { %v3364_v39 = vor.u32 %v3862_v37, %v3361_v38  ;;  %v3858_v47 = vld [vmem:[#allocation15 + $0x16c] sm:$0xf] }
 0x2b6   :  { %v1463_v62 = vadd.f32 %v1462_v53, %v4597_v8  ;;  %v3264_v8 = vor.u32 %v3840_v4, %v3263_v3  ;;  %v3348_v51 = vor.u32 %v3858_v47, %v3345_v48  ;;  %v3327_v53 = vld [vmem:[#allocation15 + $0x148] sm:$0xf]  ;;  %v3852_v3 = vld [vmem:[#allocation15 + $0x134] sm:$0xf0]  ;;  %v3818_v4 = vld [vmem:[#allocation15 + $0x2c] sm:$0xf] }
 0x2b7   :  { %2009 = vmatpush.bf16.msra.mxu1 %v3344_v45  ;;  %v3328_v57 = vor.u32 %v3856_v55, %v3327_v53  ;;  %v3527_v45 = vld [vmem:[#allocation18 + $0xe0] sm:$0xf]  ;;  %v3938_v53 = vld [vmem:[#allocation18 + $0x1e4] sm:$0xf0]  ;;  %v3464_v55 = vor.u32 %v3890_v43, %v3463_v20 }
 0x2b8   :  { %1518 = vmatmul.f32.vlgmr.msrb.gmra.mxu2 %v1463_v62  ;;  %1538 = vmatmul.f32.vlgmr.msrb.gmra.mxu3 %v1463_v62  ;;  %v3329_v62 = vld [vmem:[#allocation15 + $0x158] sm:$0xf0]  ;;  %v3591_v48 = vld [vmem:[#allocation18 + $0x160] sm:$0xf]  ;;  %v3656_v63 = vor.u32 %v3938_v53, %v3655_v52  ;;  %v3894_v43 = vld [vmem:[#allocation18 + $0x84] sm:$0xf0] }
 0x2b9   :  { %2018 = vmatpush.bf16.msrb.mxu2 %v3284_v2  ;;  %2031 = vmatpush.bf16.msrb.mxu3 %v3412_v6  ;;  %v3332_v1 = vor.u32 %v3854_v60, %v3329_v62  ;;  %v3311_v2 = vld [vmem:[#allocation15 + $0x128] sm:$0xf]  ;;  %v3185_v6 = vld [vmem:[#allocation15 + $0x38] sm:$0xf0]  ;;  %v3583_v62 = vld [vmem:[#allocation18 + $0x150] sm:$0xf] }
 0x2ba   :  { %1993 = vmatpush.bf16.msra.mxu0 %v3264_v8  ;;  %v3312_v10 = vor.u32 %v3852_v3, %v3311_v2  ;;  %v3188_v11 = vor.u32 %v3818_v4, %v3185_v6  ;;  %v3816_v8 = vld [vmem:[#allocation15 + $0x14] sm:$0xf0]  ;;  %v3904_v60 = vld [vmem:[#allocation18 + $0xd4] sm:$0xf0]  ;;  %v3447_v4 = vld [vmem:[#allocation18 + $0x40] sm:$0xf] }
 0x2bb   :  { %2010 = vmatpush.bf16.msra.mxu1 %v3328_v57  ;;  %v3168_v21 = vor.u32 %v3816_v8, %v3167_v12  ;;  %v3888_v57 = vld [vmem:[#allocation18 + $0x54] sm:$0xf0]  ;;  %v3520_v6 = vor.u32 %v3904_v60, %v3519_v59  ;;  %v3918_v8 = vld [vmem:[#allocation18 + $0x144] sm:$0xf0]  ;;  %v3479_v20 = vld [vmem:[#allocation18 + $0x80] sm:$0xf] }
 0x2bc   :  { %v3936_v2 = vld [vmem:[#allocation18 + $0x1d4] sm:$0xf0]  ;;  %v3537_v52 = vld [vmem:[#allocation18 + $0xf8] sm:$0xf0] }
 0x2bd   :  { %2019 = vmatpush.bf16.msrb.mxu2 %v3268_v14  ;;  %2032 = vmatpush.bf16.msrb.mxu3 %v3396_v15  ;;  %v3316_v14 = vor.u32 %v3850_v7, %v3313_v9  ;;  %v3848_v15 = vld [vmem:[#allocation15 + $0x114] sm:$0xf0]  ;;  %v3511_v7 = vld [vmem:[#allocation18 + $0xc0] sm:$0xf]  ;;  %v3902_v9 = vld [vmem:[#allocation18 + $0xc4] sm:$0xf0] }
 0x2be   :  { %1994 = vmatpush.bf16.msra.mxu0 %v3248_v19  ;;  %v3297_v19 = vld [vmem:[#allocation15 + $0x118] sm:$0xf0]  ;;  %v3296_v22 = vor.u32 %v3848_v15, %v3295_v13  ;;  %v3639_v13 = vld [vmem:[#allocation18 + $0x1c0] sm:$0xf]  ;;  %v3512_v17 = vor.u32 %v3902_v9, %v3511_v7  ;;  %v3457_v59 = vld [vmem:[#allocation18 + $0x58] sm:$0xf0] }
 0x2bf   :  { %2011 = vmatpush.bf16.msra.mxu1 %v3312_v10  ;;  %v3300_v24 = vor.u32 %v3846_v18, %v3297_v19  ;;  %v3584_v10 = vor.u32 %v3920_v0, %v3583_v62  ;;  %v3884_v18 = vld [vmem:[#allocation18 + $0x34] sm:$0xf0]  ;;  %v3503_v19 = vld [vmem:[#allocation18 + $0xb0] sm:$0xf]  ;;  %v3905_v0 = vld [vmem:[#allocation18 + $0xe4] sm:$0xf] }
 0x2c0   :  { %v3932_v62 = vld [vmem:[#allocation18 + $0x1b4] sm:$0xf0]  ;;  %v3449_v7 = vld [vmem:[#allocation18 + $0x48] sm:$0xf0] }
 0x2c1   :  { %2020 = vmatpush.bf16.msrb.mxu2 %v3252_v25  ;;  %2033 = vmatpush.bf16.msrb.mxu3 %v3380_v28  ;;  %v1496_v25 = vld [vmem:[#allocation13] sm:$0x3] }
 0x2c2   :  { %1995 = vmatpush.bf16.msra.mxu0 %v3232_v32  ;;  %v1498_v26 = vperm.slane %v1496_v25, 0  ;;  %v1499_v27 = vperm.slane %v1496_v25, 1  ;;  %v3471_v32 = vld [vmem:[#allocation18 + $0x70] sm:$0xf]  ;;  %v3916_v25 = vld [vmem:[#allocation18 + $0x134] sm:$0xf0] }
 0x2c3   :  { %2012 = vmatpush.bf16.msra.mxu1 %v3296_v22 }
 0x2c5   :  { %2021 = vmatpush.bf16.msrb.mxu2 %v3236_v50  ;;  %2034 = vmatpush.bf16.msrb.mxu3 %v3364_v39  ;;  %v3924_v50 = vld [vmem:[#allocation18 + $0x174] sm:$0xf0]  ;;  %v3663_v39 = vld [vmem:[#allocation18 + $0x1f0] sm:$0xf] }
 0x2c6   :  { %1996 = vmatpush.bf16.msra.mxu0 %v3216_v42  ;;  %v3472_v42 = vor.u32 %v3892_v33, %v3471_v32  ;;  %v3600_v47 = vor.u32 %v3924_v50, %v3599_v36  ;;  %v3664_v49 = vor.u32 %v3940_v54, %v3663_v39  ;;  %v3880_v36 = vld [vmem:[#allocation18 + $0x14] sm:$0xf0]  ;;  %v3487_v50 = vld [vmem:[#allocation18 + $0x90] sm:$0xf]  ;;  %v3415_v39 = vld [vmem:[#allocation18] sm:$0xf] }
 0x2c9   :  { %2022 = vmatpush.bf16.msrb.mxu2 %v3220_v46  ;;  %2035 = vmatpush.bf16.msrb.mxu3 %v3348_v51  ;;  %v3906_v46 = vld [vmem:[#allocation18 + $0xe4] sm:$0xf0] }
 0x2ca   :  { %1997 = vmatpush.bf16.msra.mxu0 %v3200_v56  ;;  %v3922_v51 = vld [vmem:[#allocation18 + $0x164] sm:$0xf0]  ;;  %v3455_v56 = vld [vmem:[#allocation18 + $0x50] sm:$0xf]  ;;  %v3528_v58 = vor.u32 %v3906_v46, %v3527_v45  ;;  %v3480_v45 = vor.u32 %v3894_v43, %v3479_v20  ;;  %v3665_v43 = vld [vmem:[#allocation18 + $0x1f8] sm:$0xf0] }
 0x2cb   :  { %v3456_v3 = vor.u32 %v3888_v57, %v3455_v56  ;;  %v3914_v56 = vld [vmem:[#allocation18 + $0x124] sm:$0xf0] }
 0x2cd   :  { %2023 = vmatpush.bf16.msrb.mxu2 %v3204_v61  ;;  %2036 = vmatpush.bf16.msrb.mxu3 %v3332_v1  ;;  %v3592_v61 = vor.u32 %v3922_v51, %v3591_v48  ;;  %v3647_v1 = vld [vmem:[#allocation18 + $0x1d0] sm:$0xf]  ;;  %v3465_v48 = vld [vmem:[#allocation18 + $0x68] sm:$0xf0]  ;;  %v3907_v51 = vld [vmem:[#allocation18 + $0xf4] sm:$0xf] }
 0x2ce   :  { %1998 = vmatpush.bf16.msra.mxu0 %v3184_v5  ;;  %v3886_v5 = vld [vmem:[#allocation18 + $0x44] sm:$0xf0]  ;;  %v3648_v12 = vor.u32 %v3936_v2, %v3647_v1  ;;  %v3540_v53 = vor.u32 %v3907_v51, %v3537_v52  ;;  %v3529_v1 = vld [vmem:[#allocation18 + $0xe8] sm:$0xf0]  ;;  %v3937_v52 = vld [vmem:[#allocation18 + $0x1e4] sm:$0xf] }
 0x2cf   :  { %v3448_v15 = vor.u32 %v3886_v5, %v3447_v4  ;;  %v3532_v2 = vor.u32 %v3905_v0, %v3529_v1  ;;  %v3912_v4 = vld [vmem:[#allocation18 + $0x114] sm:$0xf0]  ;;  %v3497_v51 = vld [vmem:[#allocation18 + $0xa8] sm:$0xf0]  ;;  %v3489_v0 = vld [vmem:[#allocation18 + $0x98] sm:$0xf0] }
 0x2d1   :  { %2024 = vmatpush.bf16.msrb.mxu2 %v3188_v11  ;;  %2037 = vmatpush.bf16.msrb.mxu3 %v3316_v14  ;;  %v3575_v11 = vld [vmem:[#allocation18 + $0x140] sm:$0xf]  ;;  %v3934_v14 = vld [vmem:[#allocation18 + $0x1c4] sm:$0xf0] }
 0x2d2   :  { %1999 = vmatpush.bf16.msra.mxu0 %v3168_v21  ;;  %v3900_v21 = vld [vmem:[#allocation18 + $0xb4] sm:$0xf0]  ;;  %v3576_v22 = vor.u32 %v3918_v8, %v3575_v11  ;;  %v3930_v11 = vld [vmem:[#allocation18 + $0x1a4] sm:$0xf0]  ;;  %v3903_v8 = vld [vmem:[#allocation18 + $0xd4] sm:$0xf] }
 0x2d5   :  { %2025 = vmatpush.bf16.msrb.mxu2 %v3172_v23  ;;  %2038 = vmatpush.bf16.msrb.mxu3 %v3300_v24  ;;  %v3640_v23 = vor.u32 %v3934_v14, %v3639_v13  ;;  %v3567_v24 = vld [vmem:[#allocation18 + $0x130] sm:$0xf]  ;;  %v3521_v13 = vld [vmem:[#allocation18 + $0xd8] sm:$0xf0] }
 0x2d6   :  { %v3568_v32 = vor.u32 %v3916_v25, %v3567_v24  ;;  %v3524_v14 = vor.u32 %v3903_v8, %v3521_v13  ;;  %v3615_v24 = vld [vmem:[#allocation18 + $0x190] sm:$0xf]  ;;  %v3928_v25 = vld [vmem:[#allocation18 + $0x194] sm:$0xf0]  ;;  %v3641_v13 = vld [vmem:[#allocation18 + $0x1c8] sm:$0xf0] }
 0x33b   :  { %v1519_v28 = vpop.f32.mrf.mxu2  ;;  %v1539_v29 = vpop.f32.mrf.mxu3 }
 0x33c   :  { %v1520_v30 = vadd.f32 %v1519_v28, %v1498_v26  ;;  %v1540_v31 = vadd.f32 %v1539_v29, %v1499_v27  ;;  %v3440_v26 = vor.u32 %v3884_v18, %v3439_v16  ;;  %v3431_v27 = vld [vmem:[#allocation18 + $0x20] sm:$0xf]  ;;  %v3504_v28 = vor.u32 %v3900_v21, %v3503_v19  ;;  %v3882_v29 = vld [vmem:[#allocation18 + $0x24] sm:$0xf0]  ;;  %v3883_v18 = vld [vmem:[#allocation18 + $0x34] sm:$0xf] }
 0x33d   :  { %v3432_v33 = vor.u32 %v3882_v29, %v3431_v27  ;;  %v3910_v16 = vld [vmem:[#allocation18 + $0x104] sm:$0xf0]  ;;  %v3441_v19 = vld [vmem:[#allocation18 + $0x38] sm:$0xf0]  ;;  %v3923_v21 = vld [vmem:[#allocation18 + $0x174] sm:$0xf]  ;;  %v3616_v27 = vor.u32 %v3928_v25, %v3615_v24 }
 0x33e   :  { %v1542_v37 = vmax.f32 %v1520_v30, 0.0  ;;  %v1543_v38 = vmax.f32 %v1540_v31, 0.0  ;;  %v3495_v30 = vld [vmem:[#allocation18 + $0xa0] sm:$0xf]  ;;  %v3898_v31 = vld [vmem:[#allocation18 + $0xa4] sm:$0xf0] }
 0x33f   :  { %v3496_v35 = vor.u32 %v3898_v31, %v3495_v30  ;;  %v3513_v29 = vld [vmem:[#allocation18 + $0xc8] sm:$0xf0]  ;;  %v3881_v31 = vld [vmem:[#allocation18 + $0x24] sm:$0xf]  ;;  %v3911_v25 = vld [vmem:[#allocation18 + $0x114] sm:$0xf] }
 0x340   :  { %v4610_v40 = vpack.c.bf16 %v1542_v37, %v1542_v37  ;;  %v4612_v41 = vpack.c.bf16 %v1543_v38, %v1543_v38  ;;  %v3896_v37 = vld [vmem:[#allocation18 + $0x94] sm:$0xf0]  ;;  %v3424_v38 = vor.u32 %v3880_v36, %v3423_v34  ;;  %v3607_v36 = vld [vmem:[#allocation18 + $0x180] sm:$0xf] }
 0x341   :  { %v3488_v54 = vor.u32 %v3896_v37, %v3487_v50  ;;  %v3926_v50 = vld [vmem:[#allocation18 + $0x184] sm:$0xf0] }
 0x342   :  { %1948 = vmatmul.bf16.vlgmr.msrb.gmra.mxu0 %v4610_v40  ;;  %1961 = vmatmul.bf16.vlgmr.msrb.gmra.mxu1 %v4612_v41 }
 0x343   :  { %1974 = vmatmul.bf16.vlgmr.msra.gmra.mxu2 %v4610_v40  ;;  %1987 = vmatmul.bf16.vlgmr.msra.gmra.mxu3 %v4612_v41 }
 0x344   :  { %2442 = vmatpush.bf16.msrb.mxu0 %v3472_v42  ;;  %2455 = vmatpush.bf16.msrb.mxu1 %v3536_v44  ;;  %v3878_v42 = vld [vmem:[#allocation18 + $0x4] sm:$0xf0]  ;;  %v3473_v44 = vld [vmem:[#allocation18 + $0x78] sm:$0xf0] }
 0x345   :  { %2468 = vmatpush.bf16.msra.mxu2 %v3600_v47  ;;  %2481 = vmatpush.bf16.msra.mxu3 %v3664_v49  ;;  %v3889_v47 = vld [vmem:[#allocation18 + $0x64] sm:$0xf] }
 0x346   :  { %v3468_v49 = vor.u32 %v3889_v47, %v3465_v48  ;;  %v3585_v47 = vld [vmem:[#allocation18 + $0x158] sm:$0xf0] }
 0x348   :  { %2443 = vmatpush.bf16.msrb.mxu0 %v3464_v55  ;;  %2456 = vmatpush.bf16.msrb.mxu1 %v3528_v58  ;;  %v3559_v55 = vld [vmem:[#allocation18 + $0x120] sm:$0xf]  ;;  %v3887_v58 = vld [vmem:[#allocation18 + $0x54] sm:$0xf] }
 0x349   :  { %2469 = vmatpush.bf16.msra.mxu2 %v3592_v61  ;;  %2482 = vmatpush.bf16.msra.mxu3 %v3656_v63  ;;  %v3560_v57 = vor.u32 %v3914_v56, %v3559_v55  ;;  %v3460_v60 = vor.u32 %v3887_v58, %v3457_v59  ;;  %v3631_v61 = vld [vmem:[#allocation18 + $0x1b0] sm:$0xf]  ;;  %v3657_v55 = vld [vmem:[#allocation18 + $0x1e8] sm:$0xf0]  ;;  %v3917_v59 = vld [vmem:[#allocation18 + $0x144] sm:$0xf] }
 0x34a   :  { %v3632_v63 = vor.u32 %v3932_v62, %v3631_v61  ;;  %v3660_v56 = vor.u32 %v3937_v52, %v3657_v55  ;;  %v3417_v58 = vld [vmem:[#allocation18 + $0x8] sm:$0xf0] }
 0x34b   :  { %v3577_v61 = vld [vmem:[#allocation18 + $0x148] sm:$0xf0] }
 0x34c   :  { %2444 = vmatpush.bf16.msrb.mxu0 %v3456_v3  ;;  %2457 = vmatpush.bf16.msrb.mxu1 %v3520_v6  ;;  %v3551_v3 = vld [vmem:[#allocation18 + $0x110] sm:$0xf]  ;;  %v3885_v6 = vld [vmem:[#allocation18 + $0x44] sm:$0xf]  ;;  %v3580_v62 = vor.u32 %v3917_v59, %v3577_v61 }
 0x34d   :  { %2470 = vmatpush.bf16.msra.mxu2 %v3584_v10  ;;  %2483 = vmatpush.bf16.msra.mxu3 %v3648_v12  ;;  %v3552_v5 = vor.u32 %v3912_v4, %v3551_v3  ;;  %v3452_v9 = vor.u32 %v3885_v6, %v3449_v7  ;;  %v3623_v10 = vld [vmem:[#allocation18 + $0x1a0] sm:$0xf]  ;;  %v3649_v3 = vld [vmem:[#allocation18 + $0x1d8] sm:$0xf0] }
 0x34e   :  { %v3624_v12 = vor.u32 %v3930_v11, %v3623_v10  ;;  %v3569_v6 = vld [vmem:[#allocation18 + $0x138] sm:$0xf0]  ;;  %v3893_v10 = vld [vmem:[#allocation18 + $0x84] sm:$0xf]  ;;  %v3481_v11 = vld [vmem:[#allocation18 + $0x88] sm:$0xf0] }
 0x34f   :  { %v4622_v7 = vld [vmem:[#allocation16] sm:$0xf]  ;;  %v3484_v8 = vor.u32 %v3893_v10, %v3481_v11 }
 0x350   :  { %2445 = vmatpush.bf16.msrb.mxu0 %v3448_v15  ;;  %2458 = vmatpush.bf16.msrb.mxu1 %v3512_v17  ;;  %v3543_v15 = vld [vmem:[#allocation18 + $0x100] sm:$0xf]  ;;  %v1615_v59 = vperm.slane %v4622_v7, 3 }
 0x351   :  { %2471 = vmatpush.bf16.msra.mxu2 %v3576_v22  ;;  %2484 = vmatpush.bf16.msra.mxu3 %v3640_v23  ;;  %v3544_v17 = vor.u32 %v3910_v16, %v3543_v15  ;;  %v3444_v22 = vor.u32 %v3883_v18, %v3441_v19  ;;  %v3601_v23 = vld [vmem:[#allocation18 + $0x178] sm:$0xf0]  ;;  %v3913_v15 = vld [vmem:[#allocation18 + $0x124] sm:$0xf]  ;;  %v3561_v16 = vld [vmem:[#allocation18 + $0x128] sm:$0xf0] }
 0x352   :  { %2000 = vmatmul.bf16.vlgmr.msra.gmra.mxu0 %v4610_v40  ;;  %2013 = vmatmul.bf16.vlgmr.msra.gmra.mxu1 %v4612_v41  ;;  %v3564_v18 = vor.u32 %v3913_v15, %v3561_v16  ;;  %v3931_v19 = vld [vmem:[#allocation18 + $0x1b4] sm:$0xf] }
 0x353   :  { %2026 = vmatmul.bf16.vlgmr.msrb.gmra.mxu2 %v4610_v40  ;;  %2039 = vmatmul.bf16.vlgmr.msrb.gmra.mxu3 %v4612_v41  ;;  %v3891_v40 = vld [vmem:[#allocation18 + $0x74] sm:$0xf]  ;;  %v3416_v41 = vor.u32 %v3878_v42, %v3415_v39 }
 0x354   :  { %2446 = vmatpush.bf16.msrb.mxu0 %v3440_v26  ;;  %2459 = vmatpush.bf16.msrb.mxu1 %v3504_v28  ;;  %v3476_v46 = vor.u32 %v3891_v40, %v3473_v44  ;;  %v3604_v26 = vor.u32 %v3923_v21, %v3601_v23  ;;  %v3901_v28 = vld [vmem:[#allocation18 + $0xc4] sm:$0xf]  ;;  %v3899_v39 = vld [vmem:[#allocation18 + $0xb4] sm:$0xf]  ;;  %v3633_v21 = vld [vmem:[#allocation18 + $0x1b8] sm:$0xf0] }
 0x355   :  { %2472 = vmatpush.bf16.msra.mxu2 %v3568_v32  ;;  %2485 = vmatpush.bf16.msra.mxu3 %v3632_v63  ;;  %v3516_v30 = vor.u32 %v3901_v28, %v3513_v29  ;;  %v3433_v32 = vld [vmem:[#allocation18 + $0x28] sm:$0xf0]  ;;  %v3939_v42 = vld [vmem:[#allocation18 + $0x1f4] sm:$0xf] }
 0x356   :  { %v3436_v34 = vor.u32 %v3881_v31, %v3433_v32  ;;  %v3668_v40 = vor.u32 %v3939_v42, %v3665_v43  ;;  %v3879_v44 = vld [vmem:[#allocation18 + $0x14] sm:$0xf]  ;;  %v3909_v31 = vld [vmem:[#allocation18 + $0x104] sm:$0xf]  ;;  %v3545_v32 = vld [vmem:[#allocation18 + $0x108] sm:$0xf0] }
 0x357   :  { %v3895_v63 = vld [vmem:[#allocation18 + $0x94] sm:$0xf] }
 0x358   :  { %2447 = vmatpush.bf16.msrb.mxu0 %v3432_v33  ;;  %2460 = vmatpush.bf16.msrb.mxu1 %v3496_v35  ;;  %v3921_v33 = vld [vmem:[#allocation18 + $0x164] sm:$0xf]  ;;  %v3593_v35 = vld [vmem:[#allocation18 + $0x168] sm:$0xf0]  ;;  %v3492_v1 = vor.u32 %v3895_v63, %v3489_v0 }
 0x359   :  { %2473 = vmatpush.bf16.msra.mxu2 %v3560_v57  ;;  %2486 = vmatpush.bf16.msra.mxu3 %v3624_v12  ;;  %v3596_v37 = vor.u32 %v3921_v33, %v3593_v35  ;;  %v3877_v57 = vld [vmem:[#allocation18 + $0x4] sm:$0xf]  ;;  %v3927_v35 = vld [vmem:[#allocation18 + $0x194] sm:$0xf] }
 0x35a   :  { %v3933_v12 = vld [vmem:[#allocation18 + $0x1c4] sm:$0xf] }
 0x35c   :  { %2448 = vmatpush.bf16.msrb.mxu0 %v3424_v38  ;;  %2461 = vmatpush.bf16.msrb.mxu1 %v3488_v54  ;;  %v3608_v38 = vor.u32 %v3926_v50, %v3607_v36  ;;  %v3505_v54 = vld [vmem:[#allocation18 + $0xb8] sm:$0xf0]  ;;  %v1613_v50 = vperm.slane %v4622_v7, 1 }
 0x35d   :  { %2474 = vmatpush.bf16.msra.mxu2 %v3552_v5  ;;  %2487 = vmatpush.bf16.msra.mxu3 %v3616_v27  ;;  %v3508_v20 = vor.u32 %v3899_v39, %v3505_v54  ;;  %v3915_v5 = vld [vmem:[#allocation18 + $0x134] sm:$0xf]  ;;  %v3929_v27 = vld [vmem:[#allocation18 + $0x1a4] sm:$0xf]  ;;  %v3617_v36 = vld [vmem:[#allocation18 + $0x198] sm:$0xf0] }
 0x35e   :  { %v3620_v39 = vor.u32 %v3927_v35, %v3617_v36 }
 0x360   :  { %2449 = vmatpush.bf16.msrb.mxu0 %v3416_v41  ;;  %2462 = vmatpush.bf16.msrb.mxu1 %v3480_v45  ;;  %v3425_v41 = vld [vmem:[#allocation18 + $0x18] sm:$0xf0] }
 0x361   :  { %2475 = vmatpush.bf16.msra.mxu2 %v3544_v17  ;;  %2488 = vmatpush.bf16.msra.mxu3 %v3608_v38  ;;  %v3428_v45 = vor.u32 %v3879_v44, %v3425_v41  ;;  %v1612_v17 = vperm.slane %v4622_v7, 0  ;;  %v3925_v41 = vld [vmem:[#allocation18 + $0x184] sm:$0xf] }
 0x364   :  { %2494 = vmatpush.bf16.msra.mxu0 %v3476_v46  ;;  %2507 = vmatpush.bf16.msra.mxu1 %v3540_v53  ;;  %v3919_v46 = vld [vmem:[#allocation18 + $0x154] sm:$0xf] }
 0x365   :  { %2520 = vmatpush.bf16.msrb.mxu2 %v3604_v26  ;;  %2533 = vmatpush.bf16.msrb.mxu3 %v3668_v40  ;;  %v3588_v48 = vor.u32 %v3919_v46, %v3585_v47  ;;  %v3553_v26 = vld [vmem:[#allocation18 + $0x118] sm:$0xf0] }
 0x366   :  { %v3556_v29 = vor.u32 %v3911_v25, %v3553_v26 }
 0x368   :  { %2495 = vmatpush.bf16.msra.mxu0 %v3468_v49  ;;  %2508 = vmatpush.bf16.msra.mxu1 %v3532_v2  ;;  %v3897_v49 = vld [vmem:[#allocation18 + $0xa4] sm:$0xf]  ;;  %v3935_v2 = vld [vmem:[#allocation18 + $0x1d4] sm:$0xf] }
 0x369   :  { %2521 = vmatpush.bf16.msrb.mxu2 %v3596_v37  ;;  %v3500_v53 = vor.u32 %v3897_v49, %v3497_v51  ;;  %2534 = vmatpush.bf16.msrb.mxu3 %v3660_v56  ;;  %v3652_v4 = vor.u32 %v3935_v2, %v3649_v3  ;;  %v3548_v37 = vor.u32 %v3909_v31, %v3545_v32  ;;  %v1614_v49 = vperm.slane %v4622_v7, 2 }
 0x36c   :  { %2496 = vmatpush.bf16.msra.mxu0 %v3460_v60  ;;  %2509 = vmatpush.bf16.msra.mxu1 %v3524_v14  ;;  %v3420_v60 = vor.u32 %v3877_v57, %v3417_v58  ;;  %v3644_v14 = vor.u32 %v3933_v12, %v3641_v13  ;;  %v2116_v13 = vld [vmem:[#allocation19] sm:$0x3] }
 0x36d   :  { %2522 = vmatpush.bf16.msrb.mxu2 %v3588_v48  ;;  %2535 = vmatpush.bf16.msrb.mxu3 %v3652_v4 }
 0x370   :  { %2497 = vmatpush.bf16.msra.mxu0 %v3452_v9  ;;  %2510 = vmatpush.bf16.msra.mxu1 %v3516_v30  ;;  %v3572_v9 = vor.u32 %v3915_v5, %v3569_v6  ;;  %v3625_v30 = vld [vmem:[#allocation18 + $0x1a8] sm:$0xf0] }
 0x371   :  { %2523 = vmatpush.bf16.msrb.mxu2 %v3580_v62  ;;  %2536 = vmatpush.bf16.msrb.mxu3 %v3644_v14  ;;  %v3628_v33 = vor.u32 %v3929_v27, %v3625_v30  ;;  %v2118_v14 = vperm.slane %v2116_v13, 0 }
 0x374   :  { %2498 = vmatpush.bf16.msra.mxu0 %v3444_v22  ;;  %2511 = vmatpush.bf16.msra.mxu1 %v3508_v20  ;;  %v3636_v22 = vor.u32 %v3931_v19, %v3633_v21 }
 0x375   :  { %2524 = vmatpush.bf16.msrb.mxu2 %v3572_v9 }
 0x376   :  { %2537 = vmatpush.bf16.msrb.mxu3 %v3636_v22 }
 0x378   :  { %2499 = vmatpush.bf16.msra.mxu0 %v3436_v34  ;;  %2512 = vmatpush.bf16.msra.mxu1 %v3500_v53 }
 0x379   :  { %2525 = vmatpush.bf16.msrb.mxu2 %v3564_v18 }
 0x37a   :  { %2538 = vmatpush.bf16.msrb.mxu3 %v3628_v33 }
 0x37c   :  { %2500 = vmatpush.bf16.msra.mxu0 %v3428_v45  ;;  %2513 = vmatpush.bf16.msra.mxu1 %v3492_v1  ;;  %v3609_v45 = vld [vmem:[#allocation18 + $0x188] sm:$0xf0] }
 0x37d   :  { %2526 = vmatpush.bf16.msrb.mxu2 %v3556_v29  ;;  %v3612_v47 = vor.u32 %v3925_v41, %v3609_v45 }
 0x37e   :  { %2539 = vmatpush.bf16.msrb.mxu3 %v3620_v39 }
 0x380   :  { %2501 = vmatpush.bf16.msra.mxu0 %v3420_v60  ;;  %2514 = vmatpush.bf16.msra.mxu1 %v3484_v8 }
 0x381   :  { %2527 = vmatpush.bf16.msrb.mxu2 %v3548_v37 }
 0x382   :  { %2540 = vmatpush.bf16.msrb.mxu3 %v3612_v47 }
 0x3bf   :  { %v1949_v23 = vpop.f32.mrf.mxu0  ;;  %v1962_v24 = vpop.f32.mrf.mxu1 }
 0x3c0   :  { %v1950_v28 = vadd.f32 %v1949_v23, %v1612_v17 }
 0x3c2   :  { %v1963_v34 = vadd.f32 %v1962_v24, %v1950_v28  ;;  %v2119_v28 = vperm.slane %v2116_v13, 1 }
 0x3c4   :  { %v2044_v38 = vmax.f32 %v1963_v34, 0.0 }
 0x3c6   :  { %v2048_v54 = vpack.c.bf16 %v2044_v38, %v2044_v38  ;;  %v1975_v42 = vpop.f32.mrf.mxu2  ;;  %v1988_v20 = vpop.f32.mrf.mxu3 }
 0x3c7   :  { %v1976_v43 = vadd.f32 %v1975_v42, %v1613_v50  ;;  %v1951_v40 = vpop.f32.mrf.mxu0  ;;  %v1964_v44 = vpop.f32.mrf.mxu1 }
 0x3c8   :  { %2450 = vmatmul.bf16.vlgmr.msrb.gmra.mxu0 %v2048_v54 }
 0x3c9   :  { %v1989_v46 = vadd.f32 %v1988_v20, %v1976_v43 }
 0x3cb   :  { %v2045_v48 = vmax.f32 %v1989_v46, 0.0 }
 0x3cd   :  { %v2049_v51 = vpack.c.bf16 %v2045_v48, %v2045_v48 }
 0x3ce   :  { %v1977_v52 = vpop.f32.mrf.mxu2  ;;  %v1990_v53 = vpop.f32.mrf.mxu3 }
 0x3cf   :  { %2463 = vmatmul.bf16.vlgmr.msrb.gmra.mxu1 %v2049_v51  ;;  %v2001_v55 = vpop.f32.mrf.mxu0  ;;  %v2014_v56 = vpop.f32.mrf.mxu1 }
 0x3d0   :  { %v2002_v57 = vadd.f32 %v2001_v55, %v1614_v49 }
 0x3d2   :  { %v2015_v58 = vadd.f32 %v2014_v56, %v2002_v57 }
 0x3d4   :  { %v2046_v60 = vmax.f32 %v2015_v58, 0.0 }
 0x3d6   :  { %v2050_v61 = vpack.c.bf16 %v2046_v60, %v2046_v60  ;;  %v2027_v62 = vpop.f32.mrf.mxu2  ;;  %v2040_v63 = vpop.f32.mrf.mxu3 }
 0x3d7   :  { %v2028_v0 = vadd.f32 %v2027_v62, %v1615_v59  ;;  %v2003_v1 = vpop.f32.mrf.mxu0  ;;  %v2016_v2 = vpop.f32.mrf.mxu1 }
 0x3d8   :  { %2476 = vmatmul.bf16.vlgmr.msra.gmra.mxu2 %v2050_v61  ;;  %2502 = vmatmul.bf16.vlgmr.msra.gmra.mxu0 %v2048_v54 }
 0x3d9   :  { %v2041_v3 = vadd.f32 %v2040_v63, %v2028_v0 }
 0x3db   :  { %v2047_v4 = vmax.f32 %v2041_v3, 0.0 }
 0x3dd   :  { %v2051_v5 = vpack.c.bf16 %v2047_v4, %v2047_v4 }
 0x3de   :  { %v2029_v6 = vpop.f32.mrf.mxu2  ;;  %v2042_v9 = vpop.f32.mrf.mxu3 }
 0x3df   :  { %2489 = vmatmul.bf16.vlgmr.msra.gmra.mxu3 %v2051_v5  ;;  %2515 = vmatmul.bf16.vlgmr.msra.gmra.mxu1 %v2049_v51 }
 0x3e8   :  { %2528 = vmatmul.bf16.vlgmr.msrb.gmra.mxu2 %v2050_v61 }
 0x3ef   :  { %2541 = vmatmul.bf16.vlgmr.msrb.gmra.mxu3 %v2051_v5 }
 0x445   :  { %v2451_v10 = vpop.f32.mrf.mxu0 }
 0x446   :  { %v2452_v17 = vadd.f32 %v2451_v10, %v2118_v14 }
 0x44c   :  { %v2464_v7 = vpop.f32.mrf.mxu1 }
 0x44d   :  { %v2453_v11 = vpop.f32.mrf.mxu0  ;;  %v2465_v19 = vadd.f32 %v2464_v7, %v2452_v17 }
 0x454   :  { %v2466_v12 = vpop.f32.mrf.mxu1 }
 0x455   :  { %v2503_v8 = vpop.f32.mrf.mxu0 }
 0x456   :  { %v2504_v31 = vadd.f32 %v2503_v8, %v2119_v28 }
 0x45b   :  { %v2477_v15 = vpop.f32.mrf.mxu2 }
 0x45c   :  { %v2516_v16 = vpop.f32.mrf.mxu1  ;;  %v2478_v21 = vadd.f32 %v2477_v15, %v2465_v19 }
 0x45d   :  { %v2505_v18 = vpop.f32.mrf.mxu0  ;;  %v2517_v33 = vadd.f32 %v2516_v16, %v2504_v31 }
 0x462   :  { %v2490_v22 = vpop.f32.mrf.mxu3 }
 0x463   :  { %v2491_v23 = vadd.f32 %v2490_v22, %v2478_v21  ;;  %v2479_v24 = vpop.f32.mrf.mxu2 }
 0x464   :  { %v2518_v25 = vpop.f32.mrf.mxu1 }
 0x465   :  { %v2546_v26 = vsub.f32 0.0, %v2491_v23 }
 0x467   :  { %v2548_v27 = vmul.f32 1.442695, %v2546_v26 }
 0x469   :  { %3960 = vpow2.f32 %v2548_v27 }
 0x46a   :  { %v2492_v29 = vpop.f32.mrf.mxu3 }
 0x46b   :  { %v2529_v30 = vpop.f32.mrf.mxu2 }
 0x46c   :  { %v2530_v35 = vadd.f32 %v2529_v30, %v2517_v33 }
 0x46f   :  { %v3961_v32 = vpop.eup %3960 }
 0x470   :  { %v2552_v34 = vadd.f32 1.0, %v3961_v32 }
 0x472   :  { %3962 = vrcp.f32 %v2552_v34  ;;  %v2542_v36 = vpop.f32.mrf.mxu3 }
 0x473   :  { %v2543_v50 = vadd.f32 %v2542_v36, %v2530_v35  ;;  %v2531_v37 = vpop.f32.mrf.mxu2 }
 0x475   :  { %v2547_v38 = vsub.f32 0.0, %v2543_v50 }
 0x477   :  { %v2550_v39 = vmul.f32 1.442695, %v2547_v38 }
 0x478   :  { %v3963_v54 = vpop.eup %3962 }
 0x479   :  { %2556 = vst [vmem:[%s4650_s16] sm:$0xff] %v3963_v54  ;;  %3964 = vpow2.f32 %v2550_v39 }
 0x47a   :  { %v2544_v42 = vpop.f32.mrf.mxu3 }
 0x47f   :  { %v3965_v20 = vpop.eup %3964 }
 0x480   :  { %v2553_v43 = vadd.f32 1.0, %v3965_v20 }
 0x482   :  { %3966 = vrcp.f32 %v2553_v43 }
 0x488   :  { %v3967_v40 = vpop.eup %3966 }
 0x489   :  { %2557 = vst [vmem:[%s4650_s16 + $0x8] sm:$0xff] %v3967_v40 }
 0x48a   :  { %2572 = vsyncpa [#allocation3], 1 }
 0x48b   :  { %2573 = vsyncpa [#allocation5], 1 }
 0x48c   :  { %2574 = vsyncpa [#allocation8], 1 }
 0x48d   :  { %2575 = vsyncpa [#allocation11], 1 }
 0x48e   :  { %2576 = vsyncpa [#allocation14], 1 }
 0x48f   :  { %2577 = vsyncpa [#allocation17], 1 }
 0x490   :  { %2578 = vsyncpa [#allocation20], 1 }

</bundles_post_ra>
